<compile_context>
chip_gen: v7x
topology: tpu7x:2x2x1
jax: 0.10.0
libtpu: 0.0.40
codegen_flags: <defaults>
</compile_context>

<pallas_src>
import functools

import numpy as np
import jax
import jax.numpy as jnp
from jax.experimental import pallas as pl
from jax.experimental.pallas import tpu as pltpu


# ----------------------------------------------------------------------------
# Pallas kernel
# ----------------------------------------------------------------------------
def _dwconv3x3_kernel(w_ref, b_ref, x_ref, o_ref, xp_ref, *, H, W):
    """Shared-filter 3x3 conv (zero padding) over a tile of feature maps.

    w_ref : SMEM (9,)  f32           filter taps, row-major 3x3
    b_ref : SMEM (1,)  f32           bias
    x_ref : VMEM (TB, H, W)          input maps (no halo; halo built here)
    o_ref : VMEM (TB, H, W)          output maps
    xp_ref: VMEM (TB, H+2, W+2) f32  scratch holding the zero-padded tile
    """
    # Build the zero halo fresh every grid step (the grid axis is 'parallel',
    # so we never rely on scratch state carried across steps / cores).
    xp_ref[...] = jnp.zeros(xp_ref.shape, jnp.float32)
    xv = x_ref[...].astype(jnp.float32)
    xp_ref[:, 1:H + 1, 1:W + 1] = xv

    # Hoist the 9 tap scalars + bias (SMEM reads) out of the arithmetic.
    w = [w_ref[k] for k in range(9)]
    b = b_ref[0]

    # Stage 1: horizontal (lane-direction) windows of the padded tile, shared
    # across all three kernel rows -> 3 lane-offset reads instead of 9.
    xl = xp_ref[:, :, 0:W]          # x[., w-1]  (zero in the left pad column)
    xc = xp_ref[:, :, 1:W + 1]      # x[., w  ]
    xr = xp_ref[:, :, 2:W + 2]      # x[., w+1]  (zero in the right pad column)
    r0 = w[0] * xl + w[1] * xc + w[2] * xr      # (TB, H+2, W) : kernel row 0
    r1 = w[3] * xl + w[4] * xc + w[5] * xr      #                kernel row 1
    r2 = w[6] * xl + w[7] * xc + w[8] * xr      #                kernel row 2

    # Stage 2: vertical (sublane-direction) combination via row windows of the
    # padded row extent.  out[h] = b + r0[h] + r1[h+1] + r2[h+2].
    acc = b + r0[:, 0:H, :] + r1[:, 1:H + 1, :] + r2[:, 2:H + 2, :]
    o_ref[...] = acc.astype(o_ref.dtype)


# ----------------------------------------------------------------------------
# Tiling heuristic
# ----------------------------------------------------------------------------
def _pick_block_b(B, H, W, budget_bytes=8 << 20):
    """Block size along the fused N*C axis.

    Largest block within a conservative VMEM budget (double-buffered in/out,
    halo scratch, live f32 temporaries), then split into >= 4 grid steps once
    there is enough work so v7x's two TensorCores both get blocks and each has
    pipelining overlap.  Uses cdiv downstream, so awkward B never collapses
    the block size to 1.
    """
    bytes_per_map = 4 * (4 * H * W + 7 * (H + 2) * (W + 2))
    tb = max(1, min(B, budget_bytes // bytes_per_map))
    if B >= 32 and pl.cdiv(B, tb) < 4:
        tb = max(8, pl.cdiv(B, 4))
    return int(tb)


# ----------------------------------------------------------------------------
# Wrapper
# ----------------------------------------------------------------------------
def depthwise_clipseg_forward(x, weight, bias):
    """x: (N, C, H, W); weight: (1, 1, 3, 3) (or (3, 3)); bias: (1,)."""
    N, C, H, W = x.shape
    B = N * C

    # Same filter for every (batch, channel) map -> fuse them into one axis.
    # Leading-dim merge is layout-preserving (no HBM copy, unlike a pad).
    xf = x.reshape(B, H, W)
    w_flat = weight.reshape(9).astype(jnp.float32)
    b_flat = bias.reshape(1).astype(jnp.float32)

    TB = _pick_block_b(B, H, W)
    grid = (pl.cdiv(B, TB),)   # Pallas clamps the ragged last block's DMA.

    elem_bytes = jnp.dtype(x.dtype).itemsize
    cost = pl.CostEstimate(
        flops=18 * B * H * W,
        transcendentals=0,
        bytes_accessed=2 * B * H * W * elem_bytes,
    )

    kern = functools.partial(_dwconv3x3_kernel, H=H, W=W)
    out = pl.pallas_call(
        kern,
        out_shape=jax.ShapeDtypeStruct((B, H, W), x.dtype),
        grid_spec=pltpu.PrefetchScalarGridSpec(
            num_scalar_prefetch=0,
            grid=grid,
            in_specs=[
                pl.BlockSpec(memory_space=pltpu.MemorySpace.SMEM),   # 9 taps
                pl.BlockSpec(memory_space=pltpu.MemorySpace.SMEM),   # bias
                pl.BlockSpec((TB, H, W), lambda i: (i, 0, 0)),       # maps
            ],
            out_specs=pl.BlockSpec((TB, H, W), lambda i: (i, 0, 0)),
            scratch_shapes=[pltpu.VMEM((TB, H + 2, W + 2), jnp.float32)],
        ),
        compiler_params=pltpu.CompilerParams(
            dimension_semantics=("parallel",),
            vmem_limit_bytes=32 * 1024 * 1024,
        ),
        cost_estimate=cost,
    )(w_flat, b_flat, xf)

    return out.reshape(N, C, H, W)


# ----------------------------------------------------------------------------
# Pure-JAX reference (PyTorch Conv2d semantics) for self-check
# ----------------------------------------------------------------------------
def _reference(x, weight, bias):
    N, C, H, W = x.shape
    w = weight.reshape(3, 3).astype(jnp.float32)
    xp = jnp.pad(x.astype(jnp.float32), ((0, 0), (0, 0), (1, 1), (1, 1)))
    out = jnp.full((N, C, H, W), bias.reshape(())[()], jnp.float32)
    for i in range(3):
        for j in range(3):
            out = out + w[i, j] * xp[:, :, i:i + H, j:j + W]
    return out.astype(x.dtype)


# ----------------------------------------------------------------------------
if __name__ == "__main__":
    key = jax.random.PRNGKey(0)
    kx, kw, kb = jax.random.split(key, 3)

    N, C, H, W = 2, 4, 16, 16
    x = jax.random.normal(kx, (N, C, H, W), jnp.float32)

    # nn.Conv2d(1, 1, 3, padding=1) parameters (default uniform init bounds).
    bound = 1.0 / np.sqrt(9.0)
    weight = jax.random.uniform(kw, (1, 1, 3, 3), jnp.float32, -bound, bound)
    bias = jax.random.uniform(kb, (1,), jnp.float32, -bound, bound)

    out = jax.jit(depthwise_clipseg_forward)(x, weight, bias)
    out = jax.block_until_ready(out)

    assert out.shape == (N, C, H, W), out.shape
    ref = _reference(x, weight, bias)
    max_err = float(jnp.max(jnp.abs(out - ref)))
    assert jnp.allclose(out, ref, atol=1e-4, rtol=1e-4), max_err

    print("KERNEL_OK")
</pallas_src>

<mosaic_0001>
module attributes {stable_mosaic.version = 11 : i64} {
  func.func @_dwconv3x3_kernel(%arg0: i32, %arg1: memref<9xf32, #tpu.memory_space<smem>>, %arg2: memref<1xf32, #tpu.memory_space<smem>>, %arg3: memref<8x16x16xf32, #tpu.memory_space<vmem>>, %arg4: memref<8x16x16xf32, #tpu.memory_space<vmem>>, %arg5: memref<8x18x18xf32, #tpu.memory_space<vmem>>) attributes {dimension_semantics = [#tpu.dimension_semantics<parallel>], iteration_bounds = array<i64: 1>, scalar_prefetch = 0 : i64, scratch_operands = 1 : i64, tpu.core_type = #tpu.core_type<tc>, window_params = [{transform_indices = @transform_0, window_bounds = array<i64: 9>}, {transform_indices = @transform_1, window_bounds = array<i64: 1>}, {transform_indices = @transform_2, window_bounds = array<i64: 8, 16, 16>}, {transform_indices = @transform_3, window_bounds = array<i64: 8, 16, 16>}]} {
    %cst = arith.constant 0.000000e+00 : f32
    %0 = vector.broadcast %cst : f32 to vector<8x18x18xf32>
    %c0 = arith.constant 0 : index
    %c0_0 = arith.constant 0 : index
    %c0_1 = arith.constant 0 : index
    %1 = vector.load %arg5[%c0, %c0_0, %c0_1] : memref<8x18x18xf32, #tpu.memory_space<vmem>>, vector<8x18x18xf32>
    tpu.vector_store %arg5[%c0, %c0_0, %c0_1], %0 {strides = array<i32>} : memref<8x18x18xf32, #tpu.memory_space<vmem>>, vector<8x18x18xf32>,
    %c0_2 = arith.constant 0 : index
    %c0_3 = arith.constant 0 : index
    %c0_4 = arith.constant 0 : index
    %2 = vector.load %arg3[%c0_2, %c0_3, %c0_4] : memref<8x16x16xf32, #tpu.memory_space<vmem>>, vector<8x16x16xf32>
    %c0_5 = arith.constant 0 : index
    %c1 = arith.constant 1 : index
    %c1_6 = arith.constant 1 : index
    %3 = vector.load %arg5[%c0_5, %c1, %c1_6] : memref<8x18x18xf32, #tpu.memory_space<vmem>>, vector<8x16x16xf32>
    tpu.vector_store %arg5[%c0_5, %c1, %c1_6], %2 {strides = array<i32>} : memref<8x18x18xf32, #tpu.memory_space<vmem>>, vector<8x16x16xf32>,
    %c0_7 = arith.constant 0 : index
    %4 = memref.load %arg1[%c0_7] : memref<9xf32, #tpu.memory_space<smem>>
    %c1_8 = arith.constant 1 : index
    %5 = memref.load %arg1[%c1_8] : memref<9xf32, #tpu.memory_space<smem>>
    %c2 = arith.constant 2 : index
    %6 = memref.load %arg1[%c2] : memref<9xf32, #tpu.memory_space<smem>>
    %c3 = arith.constant 3 : index
    %7 = memref.load %arg1[%c3] : memref<9xf32, #tpu.memory_space<smem>>
    %c4 = arith.constant 4 : index
    %8 = memref.load %arg1[%c4] : memref<9xf32, #tpu.memory_space<smem>>
    %c5 = arith.constant 5 : index
    %9 = memref.load %arg1[%c5] : memref<9xf32, #tpu.memory_space<smem>>
    %c6 = arith.constant 6 : index
    %10 = memref.load %arg1[%c6] : memref<9xf32, #tpu.memory_space<smem>>
    %c7 = arith.constant 7 : index
    %11 = memref.load %arg1[%c7] : memref<9xf32, #tpu.memory_space<smem>>
    %c8 = arith.constant 8 : index
    %12 = memref.load %arg1[%c8] : memref<9xf32, #tpu.memory_space<smem>>
    %c0_9 = arith.constant 0 : index
    %13 = memref.load %arg2[%c0_9] : memref<1xf32, #tpu.memory_space<smem>>
    %c0_10 = arith.constant 0 : index
    %c0_11 = arith.constant 0 : index
    %c0_12 = arith.constant 0 : index
    %14 = vector.load %arg5[%c0_10, %c0_11, %c0_12] : memref<8x18x18xf32, #tpu.memory_space<vmem>>, vector<8x18x16xf32>
    %c0_13 = arith.constant 0 : index
    %c0_14 = arith.constant 0 : index
    %c1_15 = arith.constant 1 : index
    %15 = vector.load %arg5[%c0_13, %c0_14, %c1_15] : memref<8x18x18xf32, #tpu.memory_space<vmem>>, vector<8x18x16xf32>
    %c0_16 = arith.constant 0 : index
    %c0_17 = arith.constant 0 : index
    %c2_18 = arith.constant 2 : index
    %16 = vector.load %arg5[%c0_16, %c0_17, %c2_18] : memref<8x18x18xf32, #tpu.memory_space<vmem>>, vector<8x18x16xf32>
    %17 = vector.broadcast %4 : f32 to vector<8x18x16xf32>
    %18 = arith.mulf %17, %14 : vector<8x18x16xf32>
    %19 = vector.broadcast %5 : f32 to vector<8x18x16xf32>
    %20 = arith.mulf %19, %15 : vector<8x18x16xf32>
    %21 = arith.addf %18, %20 : vector<8x18x16xf32>
    %22 = vector.broadcast %6 : f32 to vector<8x18x16xf32>
    %23 = arith.mulf %22, %16 : vector<8x18x16xf32>
    %24 = arith.addf %21, %23 : vector<8x18x16xf32>
    %25 = vector.broadcast %7 : f32 to vector<8x18x16xf32>
    %26 = arith.mulf %25, %14 : vector<8x18x16xf32>
    %27 = vector.broadcast %8 : f32 to vector<8x18x16xf32>
    %28 = arith.mulf %27, %15 : vector<8x18x16xf32>
    %29 = arith.addf %26, %28 : vector<8x18x16xf32>
    %30 = vector.broadcast %9 : f32 to vector<8x18x16xf32>
    %31 = arith.mulf %30, %16 : vector<8x18x16xf32>
    %32 = arith.addf %29, %31 : vector<8x18x16xf32>
    %33 = vector.broadcast %10 : f32 to vector<8x18x16xf32>
    %34 = arith.mulf %33, %14 : vector<8x18x16xf32>
    %35 = vector.broadcast %11 : f32 to vector<8x18x16xf32>
    %36 = arith.mulf %35, %15 : vector<8x18x16xf32>
    %37 = arith.addf %34, %36 : vector<8x18x16xf32>
    %38 = vector.broadcast %12 : f32 to vector<8x18x16xf32>
    %39 = arith.mulf %38, %16 : vector<8x18x16xf32>
    %40 = arith.addf %37, %39 : vector<8x18x16xf32>
    %41 = vector.extract_strided_slice %24 {offsets = [0, 0, 0], sizes = [8, 16, 16], strides = [1, 1, 1]} : vector<8x18x16xf32> to vector<8x16x16xf32>
    %42 = vector.broadcast %13 : f32 to vector<8x16x16xf32>
    %43 = arith.addf %42, %41 : vector<8x16x16xf32>
    %44 = vector.extract_strided_slice %32 {offsets = [0, 1, 0], sizes = [8, 16, 16], strides = [1, 1, 1]} : vector<8x18x16xf32> to vector<8x16x16xf32>
    %45 = arith.addf %43, %44 : vector<8x16x16xf32>
    %46 = vector.extract_strided_slice %40 {offsets = [0, 2, 0], sizes = [8, 16, 16], strides = [1, 1, 1]} : vector<8x18x16xf32> to vector<8x16x16xf32>
    %47 = arith.addf %45, %46 : vector<8x16x16xf32>
    %c0_19 = arith.constant 0 : index
    %c0_20 = arith.constant 0 : index
    %c0_21 = arith.constant 0 : index
    %48 = vector.load %arg4[%c0_19, %c0_20, %c0_21] : memref<8x16x16xf32, #tpu.memory_space<vmem>>, vector<8x16x16xf32>
    tpu.vector_store %arg4[%c0_19, %c0_20, %c0_21], %47 {strides = array<i32>} : memref<8x16x16xf32, #tpu.memory_space<vmem>>, vector<8x16x16xf32>,
    return
  }
  func.func @transform_0(%arg0: i32) -> i32 {
    %c0_i32 = arith.constant 0 : i32
    %c0_i32_0 = arith.constant 0 : i32
    return %c0_i32 : i32
  }
  func.func @transform_1(%arg0: i32) -> i32 {
    %c0_i32 = arith.constant 0 : i32
    %c0_i32_0 = arith.constant 0 : i32
    return %c0_i32 : i32
  }
  func.func @transform_2(%arg0: i32) -> (i32, i32, i32) {
    %c0_i32 = arith.constant 0 : i32
    %c0_i32_0 = arith.constant 0 : i32
    %c0_i32_1 = arith.constant 0 : i32
    return %arg0, %c0_i32, %c0_i32_0 : i32, i32, i32
  }
  func.func @transform_3(%arg0: i32) -> (i32, i32, i32) {
    %c0_i32 = arith.constant 0 : i32
    %c0_i32_0 = arith.constant 0 : i32
    %c0_i32_1 = arith.constant 0 : i32
    return %arg0, %c0_i32, %c0_i32_0 : i32, i32, i32
  }
}

</mosaic_0001>

<bundles_post_ra>
// kernel: depthwise_clipseg_forward.1
= control target key start
LH: loop header
LB: loop body
LE: loop exit
PB: predicated region body
PF: predicated region fallthrough
CT: control target
= control target key end

     0   :  { %9 = vsyncpa [#allocation7], 0  ;;  %s2351_s0 = inlined_call_operand.vmem [shape: f32[9], index: 0, kind: input, shape index: {}]   ;;  %s2352_s1 = inlined_call_operand.<no memory space> [shape: f32[1], index: 1, kind: input, shape index: {}]   ;;  %s2353_s2 = inlined_call_operand.hbm [shape: f32[8,16,16], index: 2, kind: input, shape index: {}]   ;;  %s2354_s3 = inlined_call_operand.hbm [shape: f32[8,16,16], index: 3, kind: output, shape index: {}]  }
   0x1   :  { %10 = vsyncpa [#allocation5], 0 }
   0x2   :  { %11 = vsyncpa [#allocation6], 0  ;;  %s18_s14 = sshll.u32 %s2351_s0, 4  ;;  %s19_s14 = int_to_ptr.vmem [resolvable:$true] %s18_s14 }
   0x3   :  { %s1328_s15 = scalar_lea.vmem %s19_s14, 16  ;;  %p1333_p1 = scmp.lt.s32.totalorder %s19_s14, %s19_s14 }
   0x4   :  { %p1329_p0 = scmp.ne.s32.totalorder %s19_s14, %s1328_s15  ;;  %p1334_p2 = scmp.lt.s32.totalorder %s1328_s15, %s1328_s15 }
   0x6   :  { %p1335_p3 = por %p1334_p2, %p1333_p1 }
   0x8   :  { %p1336_p4 = pnand %p1335_p3, %p1329_p0 }
   0xa   :  { %1339 = shalt.err (!%p1336_p4)
}
   0xb   :  { %s1390_s16 = smov [#allocation4]   ;;  %s1391_s17 = smov [#allocation8]  }
   0xc   :  { %21 = dma.vmem_to_smem %s19_s14, 16, %s1390_s16, [#allocation7]  }
   0xd   :  { %s29_s18 = sshll.u32 %s1391_s17, 4  ;;  %s1340_s21 = scalar_lea.hbm %s2353_s2, 2048  ;;  %s30_s18 = int_to_ptr.vmem [resolvable:$true] %s29_s18 }
   0xe   :  { %p1341_p5 = scmp.ne.s32.totalorder %s2353_s2, %s1340_s21  ;;  %p1344_p6 = scmp.lt.u32.totalorder %s1340_s21, %s2353_s2 }
  0x10   :  { %p1346_p7 = pnand %p1344_p6, %p1341_p5 }
  0x12   :  { %1349 = shalt.err (!%p1346_p7)
}
  0x13   :  { %s1350_s25 = scalar_lea.vmem %s30_s18, 2048  ;;  %p1355_p9 = scmp.lt.s32.totalorder %s30_s18, %s30_s18 }
  0x14   :  { %p1351_p8 = scmp.ne.s32.totalorder %s30_s18, %s1350_s25  ;;  %p1356_p10 = scmp.lt.s32.totalorder %s1350_s25, %s1350_s25 }
  0x16   :  { %p1357_p11 = por %p1356_p10, %p1355_p9 }
  0x18   :  { %p1358_p12 = pnand %p1357_p11, %p1351_p8 }
  0x1a   :  { %1361 = shalt.err (!%p1358_p12)
}
  0x1b   :  { %s1392_s26 = smov 128   ;;  %s1393_s27 = smov 8  }
  0x1c   :  { %35 = dma.hbm_to_vmem [thread:$0]  %s2353_s2, 2048, %s30_s18, [#allocation5], %s1392_s26, %s1392_s26, %s1393_s27  }
  0x1d   :  { %1384 = dma.done.wait [#allocation7], 16  }
  0x1e   :  { %1385 = vsyncadd [#allocation7], 4294967280 }
  0x1f   :  { %1386 = dma.done.wait [#allocation5], 2048  }
  0x20   :  { %1387 = vsyncadd [#allocation5], 4294965248 }
  0x21   :  { %42 = sfence }
  0x22   :  { %v71_v0 = vld [vmem:[#allocation8 + $0x10] sm:$0xff]  ;;  %v69_v1 = vld [vmem:[#allocation8] sm:$0xff]  ;;  %vm43_vm0 = vcmask 146432   ;;  %s1394_s30 = smov 1   ;;  %vm46_vm1 = vcmask 140288   ;;  %v72_v2 = vld [vmem:[#allocation8 + $0x18] sm:$0xff] }
  0x23   :  { %105 = vrot.lane.b32.xlu1 %v71_v0, %s1394_s30  ;;  %101 = vrot.lane.b32.xlu0 %v69_v1, %s1394_s30  ;;  %v70_v3 = vld [vmem:[#allocation8 + $0x8] sm:$0xff]  ;;  %v1395_v4 = vmov 0.0   ;;  %v73_v5 = vld [vmem:[#allocation8 + $0x20] sm:$0xff]  ;;  %v75_v7 = vld [vmem:[#allocation8 + $0x30] sm:$0xff]  ;;  %vm149_vm2 = vcmask 138248   ;;  %s1287_s2 = sld [smem:[#allocation4 + $0x1]] }
  0x24   :  { %48 = vst.msk [vmem:[#allocation2 + $0x18] sm:$0xff] %vm43_vm0, %v1395_v4  ;;  %49 = vst.msk [vmem:[#allocation2 + $0x20] sm:$0xff] %vm43_vm0, %v1395_v4  ;;  %v74_v6 = vld [vmem:[#allocation8 + $0x28] sm:$0xff]  ;;  %v76_v8 = vld [vmem:[#allocation8 + $0x38] sm:$0xff]  ;;  %s1396_s4 = smov 127   ;;  %s1288_s5 = sld [smem:[#allocation4 + $0x2]] }
  0x25   :  { %44 = vst.msk [vmem:[#allocation2] sm:$0xff] %vm43_vm0, %v1395_v4  ;;  %45 = vst.msk [vmem:[#allocation2 + $0x8] sm:$0xff] %vm43_vm0, %v1395_v4  ;;  %v77_v9 = vld [vmem:[#allocation8 + $0x40] sm:$0xff]  ;;  %v78_v10 = vld [vmem:[#allocation8 + $0x48] sm:$0xff]  ;;  %s1397_s6 = smov 126   ;;  %s1290_s7 = sld [smem:[#allocation4 + $0x4]] }
  0x26   :  { %51 = vst.msk [vmem:[#allocation2 + $0x30] sm:$0xff] %vm43_vm0, %v1395_v4  ;;  %52 = vst.msk [vmem:[#allocation2 + $0x38] sm:$0xff] %vm43_vm0, %v1395_v4  ;;  %v79_v11 = vld [vmem:[#allocation8 + $0x50] sm:$0xff]  ;;  %v80_v12 = vld [vmem:[#allocation8 + $0x58] sm:$0xff]  ;;  %s1291_s8 = sld [smem:[#allocation4 + $0x5]]  ;;  %s1293_s9 = sld [smem:[#allocation4 + $0x7]] }
  0x27   :  { %54 = vst.msk [vmem:[#allocation2 + $0x48] sm:$0xff] %vm43_vm0, %v1395_v4  ;;  %55 = vst.msk [vmem:[#allocation2 + $0x50] sm:$0xff] %vm43_vm0, %v1395_v4  ;;  %107 = vrot.lane.b32.xlu1 %v72_v2, %s1394_s30  ;;  %103 = vrot.lane.b32.xlu0 %v70_v3, %s1394_s30  ;;  %v81_v13 = vld [vmem:[#allocation8 + $0x60] sm:$0xff]  ;;  %v82_v14 = vld [vmem:[#allocation8 + $0x68] sm:$0xff]  ;;  %s166_s10 = sld [smem:[#allocation4]]  ;;  %s1289_s11 = sld [smem:[#allocation4 + $0x3]] }
  0x28   :  { %57 = vst.msk [vmem:[#allocation2 + $0x60] sm:$0xff] %vm43_vm0, %v1395_v4  ;;  %58 = vst.msk [vmem:[#allocation2 + $0x68] sm:$0xff] %vm43_vm0, %v1395_v4  ;;  %v83_v15 = vld [vmem:[#allocation8 + $0x70] sm:$0xff]  ;;  %v84_v16 = vld [vmem:[#allocation8 + $0x78] sm:$0xff]  ;;  %s1294_s12 = sld [smem:[#allocation4 + $0x8]]  ;;  %vm1082_vm3 = vcmask 1046528  }
  0x29   :  { %60 = vst.msk [vmem:[#allocation2 + $0x78] sm:$0xff] %vm43_vm0, %v1395_v4  ;;  %61 = vst.msk [vmem:[#allocation2 + $0x80] sm:$0xff] %vm43_vm0, %v1395_v4  ;;  %v1481_v21 = vstv %s1287_s2  ;;  %vm1179_vm4 = vcmask 1045504   ;;  %vm1252_vm5 = vcmask 130048   ;;  %s1398_s15 = smov [#allocation9]  }
  0x2a   :  { %63 = vst.msk [vmem:[#allocation2 + $0x90] sm:$0xff] %vm43_vm0, %v1395_v4  ;;  %64 = vst.msk [vmem:[#allocation2 + $0x98] sm:$0xff] %vm43_vm0, %v1395_v4  ;;  %v314_v1 = vstv %s1288_s5  ;;  %s1274_s16 = sshll.u32 %s1398_s15, 4  ;;  %s1275_s16 = int_to_ptr.vmem [resolvable:$true] %s1274_s16 }
  0x2b   :  { %66 = vst.msk [vmem:[#allocation2 + $0xa8] sm:$0xff] %vm43_vm0, %v1395_v4  ;;  %67 = vst.msk [vmem:[#allocation2 + $0xb0] sm:$0xff] %vm43_vm0, %v1395_v4  ;;  %109 = vrot.lane.b32.xlu0 %v73_v5, %s1394_s30  ;;  %111 = vrot.lane.b32.xlu1 %v74_v6, %s1394_s30  ;;  %s1362_s17 = scalar_lea.vmem %s1275_s16, 2048  ;;  %p1367_p0 = scmp.lt.s32.totalorder %s1275_s16, %s1275_s16 }
  0x2c   :  { %50 = vst.msk [vmem:[#allocation2 + $0x28] sm:$0x3] %vm46_vm1, %v1395_v4  ;;  %47 = vst.msk [vmem:[#allocation2 + $0x10] sm:$0x3] %vm46_vm1, %v1395_v4  ;;  %p1363_p13 = scmp.ne.s32.totalorder %s1275_s16, %s1362_s17  ;;  %p1368_p1 = scmp.lt.s32.totalorder %s1362_s17, %s1362_s17 }
  0x2d   :  { %53 = vst.msk [vmem:[#allocation2 + $0x40] sm:$0x3] %vm46_vm1, %v1395_v4  ;;  %56 = vst.msk [vmem:[#allocation2 + $0x58] sm:$0x3] %vm46_vm1, %v1395_v4 }
  0x2e   :  { %59 = vst.msk [vmem:[#allocation2 + $0x70] sm:$0x3] %vm46_vm1, %v1395_v4  ;;  %62 = vst.msk [vmem:[#allocation2 + $0x88] sm:$0x3] %vm46_vm1, %v1395_v4  ;;  %p1369_p2 = por %p1368_p1, %p1367_p0 }
  0x2f   :  { %65 = vst.msk [vmem:[#allocation2 + $0xa0] sm:$0x3] %vm46_vm1, %v1395_v4  ;;  %68 = vst.msk [vmem:[#allocation2 + $0xb8] sm:$0x3] %vm46_vm1, %v1395_v4  ;;  %113 = vrot.lane.b32.xlu0 %v75_v7, %s1394_s30  ;;  %115 = vrot.lane.b32.xlu1 %v76_v8, %s1394_s30 }
  0x30   :  { %p1370_p3 = pnand %p1369_p2, %p1363_p13 }
  0x33   :  { %117 = vrot.lane.b32.xlu0 %v77_v9, %s1394_s30  ;;  %119 = vrot.lane.b32.xlu1 %v78_v10, %s1394_s30 }
  0x37   :  { %121 = vrot.lane.b32.xlu0 %v79_v11, %s1394_s30  ;;  %123 = vrot.lane.b32.xlu1 %v80_v12, %s1394_s30 }
  0x3b   :  { %125 = vrot.lane.b32.xlu0 %v81_v13, %s1394_s30  ;;  %127 = vrot.lane.b32.xlu1 %v82_v14, %s1394_s30 }
  0x3f   :  { %129 = vrot.lane.b32.xlu0 %v83_v15, %s1394_s30  ;;  %131 = vrot.lane.b32.xlu1 %v84_v16, %s1394_s30 }
  0x95   :  { %v106_v17 = vpop.permute.xlu1 %105  ;;  %v102_v18 = vpop.permute.xlu0 %101 }
  0x96   :  { %152 = vst.msk [vmem:[#allocation2 + $0x19] sm:$0xff] %vm149_vm2, %v106_v17  ;;  %150 = vst.msk [vmem:[#allocation2 + $0x1] sm:$0xff] %vm149_vm2, %v102_v18  ;;  %v436_v18 = vstv %s1290_s7 }
  0x99   :  { %v108_v19 = vpop.permute.xlu1 %107  ;;  %v104_v20 = vpop.permute.xlu0 %103 }
  0x9a   :  { %153 = vst.msk [vmem:[#allocation2 + $0x21] sm:$0xff] %vm149_vm2, %v108_v19  ;;  %151 = vst.msk [vmem:[#allocation2 + $0x9] sm:$0xff] %vm149_vm2, %v104_v20 }
  0x9d   :  { %v110_v22 = vpop.permute.xlu0 %109  ;;  %v1483_v23 = vld [vmem:[#allocation2] sm:$0xff]  ;;  %v112_v24 = vpop.permute.xlu1 %111  ;;  %v1485_v25 = vld [vmem:[#allocation2 + $0x18] sm:$0xff] }
  0x9e   :  { %154 = vst.msk [vmem:[#allocation2 + $0x31] sm:$0xff] %vm149_vm2, %v110_v22  ;;  %v218_v26 = vmul.f32 %v1481_v21, %v1483_v23  ;;  %155 = vst.msk [vmem:[#allocation2 + $0x39] sm:$0xff] %vm149_vm2, %v112_v24  ;;  %v220_v27 = vmul.f32 %v1481_v21, %v1485_v25  ;;  %v315_v3 = vmul.f32 %v314_v1, %v1483_v23 }
  0x9f   :  { %v317_v5 = vmul.f32 %v314_v1, %v1485_v25  ;;  %v437_v20 = vmul.f32 %v436_v18, %v1483_v23 }
  0xa0   :  { %250 = vrot.lane.b32.xlu0 %v218_v26, %s1396_s4  ;;  %v440_v26 = vmul.f32 %v436_v18, %v1485_v25 }
  0xa1   :  { %v114_v28 = vpop.permute.xlu0 %113  ;;  %v1494_v29 = vld [vmem:[#allocation2 + $0x8] sm:$0xff]  ;;  %v116_v30 = vpop.permute.xlu1 %115  ;;  %v1500_v32 = vld [vmem:[#allocation2 + $0x20] sm:$0xff] }
  0xa2   :  { %156 = vst.msk [vmem:[#allocation2 + $0x49] sm:$0xff] %vm149_vm2, %v114_v28  ;;  %v219_v31 = vmul.f32 %v1481_v21, %v1494_v29  ;;  %157 = vst.msk [vmem:[#allocation2 + $0x51] sm:$0xff] %vm149_vm2, %v116_v30  ;;  %v221_v37 = vmul.f32 %v1481_v21, %v1500_v32  ;;  %v316_v4 = vmul.f32 %v314_v1, %v1494_v29  ;;  %v1617_v28 = vld [vmem:[#allocation2 + $0x28] sm:$0x3] }
  0xa3   :  { %v318_v6 = vmul.f32 %v314_v1, %v1500_v32  ;;  %v438_v22 = vmul.f32 %v436_v18, %v1494_v29  ;;  %v442_v30 = vmul.f32 %v436_v18, %v1617_v28 }
  0xa4   :  { %252 = vrot.lane.b32.xlu1 %v219_v31, %s1396_s4  ;;  %254 = vrot.lane.b32.xlu0 %v220_v27, %s1396_s4  ;;  %v441_v27 = vmul.f32 %v436_v18, %v1500_v32 }
  0xa5   :  { %v118_v33 = vpop.permute.xlu0 %117  ;;  %v1504_v34 = vld [vmem:[#allocation2 + $0x30] sm:$0xff]  ;;  %v120_v35 = vpop.permute.xlu1 %119  ;;  %v1506_v36 = vld [vmem:[#allocation2 + $0x38] sm:$0xff] }
  0xa6   :  { %158 = vst.msk [vmem:[#allocation2 + $0x61] sm:$0xff] %vm149_vm2, %v118_v33  ;;  %v222_v38 = vmul.f32 %v1481_v21, %v1504_v34  ;;  %159 = vst.msk [vmem:[#allocation2 + $0x69] sm:$0xff] %vm149_vm2, %v120_v35  ;;  %v223_v39 = vmul.f32 %v1481_v21, %v1506_v36  ;;  %v319_v7 = vmul.f32 %v314_v1, %v1504_v34  ;;  %v1623_v33 = vld [vmem:[#allocation2 + $0x40] sm:$0x3] }
  0xa7   :  { %v320_v8 = vmul.f32 %v314_v1, %v1506_v36  ;;  %v443_v31 = vmul.f32 %v436_v18, %v1504_v34  ;;  %v444_v35 = vmul.f32 %v436_v18, %v1506_v36 }
  0xa8   :  { %256 = vrot.lane.b32.xlu1 %v221_v37, %s1396_s4  ;;  %258 = vrot.lane.b32.xlu0 %v222_v38, %s1396_s4  ;;  %v445_v37 = vmul.f32 %v436_v18, %v1623_v33 }
  0xa9   :  { %v122_v40 = vpop.permute.xlu0 %121  ;;  %v1518_v41 = vld [vmem:[#allocation2 + $0x48] sm:$0xff]  ;;  %v124_v42 = vpop.permute.xlu1 %123  ;;  %v1520_v43 = vld [vmem:[#allocation2 + $0x50] sm:$0xff] }
  0xaa   :  { %160 = vst.msk [vmem:[#allocation2 + $0x79] sm:$0xff] %vm149_vm2, %v122_v40  ;;  %v224_v44 = vmul.f32 %v1481_v21, %v1518_v41  ;;  %161 = vst.msk [vmem:[#allocation2 + $0x81] sm:$0xff] %vm149_vm2, %v124_v42  ;;  %v225_v45 = vmul.f32 %v1481_v21, %v1520_v43  ;;  %v321_v9 = vmul.f32 %v314_v1, %v1518_v41  ;;  %v1633_v40 = vld [vmem:[#allocation2 + $0x58] sm:$0x3] }
  0xab   :  { %v322_v10 = vmul.f32 %v314_v1, %v1520_v43  ;;  %v446_v38 = vmul.f32 %v436_v18, %v1518_v41  ;;  %v448_v42 = vmul.f32 %v436_v18, %v1633_v40 }
  0xac   :  { %260 = vrot.lane.b32.xlu1 %v223_v39, %s1396_s4  ;;  %262 = vrot.lane.b32.xlu0 %v224_v44, %s1396_s4  ;;  %v447_v39 = vmul.f32 %v436_v18, %v1520_v43 }
  0xad   :  { %v126_v46 = vpop.permute.xlu0 %125  ;;  %v1530_v47 = vld [vmem:[#allocation2 + $0x60] sm:$0xff]  ;;  %v128_v48 = vpop.permute.xlu1 %127  ;;  %v1532_v49 = vld [vmem:[#allocation2 + $0x68] sm:$0xff] }
  0xae   :  { %162 = vst.msk [vmem:[#allocation2 + $0x91] sm:$0xff] %vm149_vm2, %v126_v46  ;;  %v226_v50 = vmul.f32 %v1481_v21, %v1530_v47  ;;  %163 = vst.msk [vmem:[#allocation2 + $0x99] sm:$0xff] %vm149_vm2, %v128_v48  ;;  %v227_v51 = vmul.f32 %v1481_v21, %v1532_v49  ;;  %v323_v11 = vmul.f32 %v314_v1, %v1530_v47 }
  0xaf   :  { %v324_v12 = vmul.f32 %v314_v1, %v1532_v49  ;;  %v449_v44 = vmul.f32 %v436_v18, %v1530_v47  ;;  %v450_v46 = vmul.f32 %v436_v18, %v1532_v49 }
  0xb0   :  { %264 = vrot.lane.b32.xlu1 %v225_v45, %s1396_s4  ;;  %266 = vrot.lane.b32.xlu0 %v226_v50, %s1396_s4  ;;  %v1639_v45 = vld [vmem:[#allocation2 + $0x70] sm:$0x3] }
  0xb1   :  { %v130_v52 = vpop.permute.xlu0 %129  ;;  %v1542_v53 = vld [vmem:[#allocation2 + $0x78] sm:$0xff]  ;;  %v132_v54 = vpop.permute.xlu1 %131  ;;  %v1544_v55 = vld [vmem:[#allocation2 + $0x80] sm:$0xff]  ;;  %v451_v48 = vmul.f32 %v436_v18, %v1639_v45 }
  0xb2   :  { %164 = vst.msk [vmem:[#allocation2 + $0xa9] sm:$0xff] %vm149_vm2, %v130_v52  ;;  %v228_v56 = vmul.f32 %v1481_v21, %v1542_v53  ;;  %165 = vst.msk [vmem:[#allocation2 + $0xb1] sm:$0xff] %vm149_vm2, %v132_v54  ;;  %v229_v57 = vmul.f32 %v1481_v21, %v1544_v55  ;;  %v325_v13 = vmul.f32 %v314_v1, %v1542_v53  ;;  %v1649_v52 = vld [vmem:[#allocation2 + $0x88] sm:$0x3] }
  0xb3   :  { %v326_v14 = vmul.f32 %v314_v1, %v1544_v55  ;;  %v452_v50 = vmul.f32 %v436_v18, %v1542_v53  ;;  %v454_v54 = vmul.f32 %v436_v18, %v1649_v52 }
  0xb4   :  { %268 = vrot.lane.b32.xlu1 %v227_v51, %s1396_s4  ;;  %270 = vrot.lane.b32.xlu0 %v228_v56, %s1396_s4  ;;  %v453_v51 = vmul.f32 %v436_v18, %v1544_v55 }
  0xb5   :  { %v1554_v58 = vld [vmem:[#allocation2 + $0x90] sm:$0xff]  ;;  %v1556_v59 = vld [vmem:[#allocation2 + $0x98] sm:$0xff] }
  0xb6   :  { %v230_v60 = vmul.f32 %v1481_v21, %v1554_v58  ;;  %v231_v61 = vmul.f32 %v1481_v21, %v1556_v59  ;;  %v327_v15 = vmul.f32 %v314_v1, %v1554_v58  ;;  %v328_v16 = vmul.f32 %v314_v1, %v1556_v59 }
  0xb7   :  { %v455_v56 = vmul.f32 %v436_v18, %v1554_v58 }
  0xb8   :  { %272 = vrot.lane.b32.xlu1 %v229_v57, %s1396_s4  ;;  %274 = vrot.lane.b32.xlu0 %v230_v60, %s1396_s4  ;;  %v1655_v57 = vld [vmem:[#allocation2 + $0xa0] sm:$0x3]  ;;  %v456_v60 = vmul.f32 %v436_v18, %v1556_v59 }
  0xb9   :  { %v1564_v62 = vld [vmem:[#allocation2 + $0xa8] sm:$0xff]  ;;  %v1566_v63 = vld [vmem:[#allocation2 + $0xb0] sm:$0xff] }
  0xba   :  { %v232_v0 = vmul.f32 %v1481_v21, %v1564_v62  ;;  %v233_v2 = vmul.f32 %v1481_v21, %v1566_v63  ;;  %v329_v17 = vmul.f32 %v314_v1, %v1564_v62  ;;  %v330_v19 = vmul.f32 %v314_v1, %v1566_v63  ;;  %v1607_v21 = vld [vmem:[#allocation2 + $0x10] sm:$0x3] }
  0xbb   :  { %v439_v24 = vmul.f32 %v436_v18, %v1607_v21  ;;  %v459_v1 = vmul.f32 %v436_v18, %v1566_v63 }
  0xbc   :  { %276 = vrot.lane.b32.xlu1 %v231_v61, %s1396_s4  ;;  %278 = vrot.lane.b32.xlu0 %v232_v0, %s1396_s4  ;;  %v457_v61 = vmul.f32 %v436_v18, %v1655_v57  ;;  %v458_v0 = vmul.f32 %v436_v18, %v1564_v62 }
  0xc0   :  { %280 = vrot.lane.b32.xlu1 %v233_v2, %s1396_s4  ;;  %347 = vrot.lane.b32.xlu0 %v315_v3, %s1397_s6  ;;  %v1665_v2 = vld [vmem:[#allocation2 + $0xb8] sm:$0x3]  ;;  %v1667_v3 = vstv %s1291_s8 }
  0xc4   :  { %349 = vrot.lane.b32.xlu1 %v316_v4, %s1397_s6  ;;  %351 = vrot.lane.b32.xlu0 %v317_v5, %s1397_s6  ;;  %v460_v4 = vmul.f32 %v436_v18, %v1665_v2  ;;  %v582_v5 = vmul.f32 %v1667_v3, %v1483_v23 }
  0xc8   :  { %353 = vrot.lane.b32.xlu1 %v318_v6, %s1397_s6  ;;  %355 = vrot.lane.b32.xlu0 %v319_v7, %s1397_s6  ;;  %v583_v7 = vmul.f32 %v1667_v3, %v1494_v29 }
  0xcc   :  { %357 = vrot.lane.b32.xlu1 %v320_v8, %s1397_s6  ;;  %359 = vrot.lane.b32.xlu0 %v321_v9, %s1397_s6  ;;  %v584_v8 = vmul.f32 %v1667_v3, %v1607_v21 }
  0xd0   :  { %361 = vrot.lane.b32.xlu1 %v322_v10, %s1397_s6  ;;  %363 = vrot.lane.b32.xlu0 %v323_v11, %s1397_s6  ;;  %v585_v11 = vmul.f32 %v1667_v3, %v1485_v25 }
  0xd4   :  { %365 = vrot.lane.b32.xlu1 %v324_v12, %s1397_s6  ;;  %367 = vrot.lane.b32.xlu0 %v325_v13, %s1397_s6  ;;  %v586_v12 = vmul.f32 %v1667_v3, %v1500_v32 }
  0xd8   :  { %369 = vrot.lane.b32.xlu1 %v326_v14, %s1397_s6  ;;  %371 = vrot.lane.b32.xlu0 %v327_v15, %s1397_s6  ;;  %v587_v15 = vmul.f32 %v1667_v3, %v1617_v28 }
  0xdc   :  { %373 = vrot.lane.b32.xlu1 %v328_v16, %s1397_s6  ;;  %375 = vrot.lane.b32.xlu0 %v329_v17, %s1397_s6  ;;  %v588_v16 = vmul.f32 %v1667_v3, %v1504_v34 }
  0xe0   :  { %377 = vrot.lane.b32.xlu1 %v330_v19, %s1397_s6  ;;  %485 = vrot.lane.b32.xlu0 %v437_v20, %s1396_s4  ;;  %v589_v19 = vmul.f32 %v1667_v3, %v1506_v36  ;;  %v590_v20 = vmul.f32 %v1667_v3, %v1623_v33 }
  0xe4   :  { %487 = vrot.lane.b32.xlu1 %v438_v22, %s1396_s4  ;;  %489 = vrot.lane.b32.xlu0 %v439_v24, %s1396_s4 }
  0xe8   :  { %491 = vrot.lane.b32.xlu1 %v440_v26, %s1396_s4  ;;  %493 = vrot.lane.b32.xlu0 %v441_v27, %s1396_s4  ;;  %v591_v26 = vmul.f32 %v1667_v3, %v1518_v41  ;;  %v592_v27 = vmul.f32 %v1667_v3, %v1520_v43 }
  0xec   :  { %495 = vrot.lane.b32.xlu1 %v442_v30, %s1396_s4  ;;  %497 = vrot.lane.b32.xlu0 %v443_v31, %s1396_s4 }
  0xf0   :  { %499 = vrot.lane.b32.xlu1 %v444_v35, %s1396_s4  ;;  %501 = vrot.lane.b32.xlu0 %v445_v37, %s1396_s4  ;;  %v593_v35 = vmul.f32 %v1667_v3, %v1633_v40  ;;  %v594_v37 = vmul.f32 %v1667_v3, %v1530_v47 }
  0xf4   :  { %503 = vrot.lane.b32.xlu1 %v446_v38, %s1396_s4  ;;  %505 = vrot.lane.b32.xlu0 %v447_v39, %s1396_s4 }
  0xf8   :  { %507 = vrot.lane.b32.xlu1 %v448_v42, %s1396_s4  ;;  %509 = vrot.lane.b32.xlu0 %v449_v44, %s1396_s4  ;;  %v595_v42 = vmul.f32 %v1667_v3, %v1532_v49  ;;  %v596_v44 = vmul.f32 %v1667_v3, %v1639_v45 }
  0xfc   :  { %511 = vrot.lane.b32.xlu1 %v450_v46, %s1396_s4  ;;  %513 = vrot.lane.b32.xlu0 %v451_v48, %s1396_s4 }
 0x100   :  { %515 = vrot.lane.b32.xlu1 %v452_v50, %s1396_s4  ;;  %517 = vrot.lane.b32.xlu0 %v453_v51, %s1396_s4  ;;  %v597_v50 = vmul.f32 %v1667_v3, %v1542_v53  ;;  %v598_v51 = vmul.f32 %v1667_v3, %v1544_v55 }
 0x104   :  { %519 = vrot.lane.b32.xlu1 %v454_v54, %s1396_s4  ;;  %521 = vrot.lane.b32.xlu0 %v455_v56, %s1396_s4 }
 0x108   :  { %523 = vrot.lane.b32.xlu1 %v456_v60, %s1396_s4  ;;  %525 = vrot.lane.b32.xlu0 %v457_v61, %s1396_s4  ;;  %v599_v60 = vmul.f32 %v1667_v3, %v1649_v52  ;;  %v600_v61 = vmul.f32 %v1667_v3, %v1554_v58 }
 0x10c   :  { %527 = vrot.lane.b32.xlu1 %v458_v0, %s1396_s4  ;;  %529 = vrot.lane.b32.xlu0 %v459_v1, %s1396_s4 }
 0x110   :  { %531 = vrot.lane.b32.xlu1 %v460_v4, %s1396_s4  ;;  %630 = vrot.lane.b32.xlu0 %v582_v5, %s1397_s6  ;;  %v601_v4 = vmul.f32 %v1667_v3, %v1556_v59  ;;  %v602_v5 = vmul.f32 %v1667_v3, %v1655_v57 }
 0x112   :  { %v1676_v6 = vpop.permute.xlu0 %250 }
 0x114   :  { %632 = vrot.lane.b32.xlu1 %v583_v7, %s1397_s6  ;;  %634 = vrot.lane.b32.xlu0 %v584_v8, %s1397_s6 }
 0x116   :  { %v1684_v9 = vpop.permute.xlu1 %252  ;;  %v1686_v10 = vpop.permute.xlu0 %254 }
 0x118   :  { %636 = vrot.lane.b32.xlu1 %v585_v11, %s1397_s6  ;;  %638 = vrot.lane.b32.xlu0 %v586_v12, %s1397_s6  ;;  %v603_v11 = vmul.f32 %v1667_v3, %v1564_v62  ;;  %v604_v12 = vmul.f32 %v1667_v3, %v1566_v63 }
 0x11a   :  { %v1694_v13 = vpop.permute.xlu1 %256  ;;  %v1696_v14 = vpop.permute.xlu0 %258 }
 0x11c   :  { %640 = vrot.lane.b32.xlu1 %v587_v15, %s1397_s6  ;;  %642 = vrot.lane.b32.xlu0 %v588_v16, %s1397_s6  ;;  %v1778_v15 = vstv %s1293_s9 }
 0x11e   :  { %v1704_v17 = vpop.permute.xlu1 %260  ;;  %v1706_v18 = vpop.permute.xlu0 %262 }
 0x120   :  { %644 = vrot.lane.b32.xlu1 %v589_v19, %s1397_s6  ;;  %646 = vrot.lane.b32.xlu0 %v590_v20, %s1397_s6  ;;  %v605_v20 = vmul.f32 %v1667_v3, %v1665_v2 }
 0x122   :  { %v1714_v22 = vpop.permute.xlu1 %264  ;;  %v1716_v24 = vpop.permute.xlu0 %266 }
 0x123   :  { %2355 = vst [vmem:[#allocation13_spill] sm:$0xff] %v1714_v22  ;;  %2356 = vst [vmem:[#allocation14_spill] sm:$0xff] %v1716_v24 }
 0x124   :  { %648 = vrot.lane.b32.xlu1 %v591_v26, %s1397_s6  ;;  %650 = vrot.lane.b32.xlu0 %v592_v27, %s1397_s6  ;;  %v752_v26 = vmul.f32 %v1778_v15, %v1483_v23 }
 0x126   :  { %v1724_v30 = vpop.permute.xlu1 %268  ;;  %v1726_v31 = vpop.permute.xlu0 %270 }
 0x127   :  { %2357 = vst [vmem:[#allocation15_spill] sm:$0xff] %v1724_v30  ;;  %2358 = vst [vmem:[#allocation16_spill] sm:$0xff] %v1726_v31  ;;  %v771_v30 = vmul.f32 %v1778_v15, %v1556_v59 }
 0x128   :  { %652 = vrot.lane.b32.xlu1 %v593_v35, %s1397_s6  ;;  %654 = vrot.lane.b32.xlu0 %v594_v37, %s1397_s6  ;;  %v753_v37 = vmul.f32 %v1778_v15, %v1494_v29 }
 0x12a   :  { %v1734_v38 = vpop.permute.xlu1 %272  ;;  %v1736_v39 = vpop.permute.xlu0 %274 }
 0x12b   :  { %2359 = vst [vmem:[#allocation17_spill] sm:$0xff] %v1734_v38  ;;  %2360 = vst [vmem:[#allocation18_spill] sm:$0xff] %v1736_v39  ;;  %v762_v39 = vmul.f32 %v1778_v15, %v1520_v43 }
 0x12c   :  { %656 = vrot.lane.b32.xlu1 %v595_v42, %s1397_s6  ;;  %658 = vrot.lane.b32.xlu0 %v596_v44, %s1397_s6  ;;  %v754_v42 = vmul.f32 %v1778_v15, %v1607_v21 }
 0x12e   :  { %v1744_v46 = vpop.permute.xlu1 %276  ;;  %v279_v48 = vpop.permute.xlu0 %278 }
 0x12f   :  { %2361 = vst [vmem:[#allocation19_spill] sm:$0xff] %v1744_v46 }
 0x130   :  { %660 = vrot.lane.b32.xlu1 %v597_v50, %s1397_s6  ;;  %662 = vrot.lane.b32.xlu0 %v598_v51, %s1397_s6  ;;  %v755_v50 = vmul.f32 %v1778_v15, %v1485_v25  ;;  %v756_v51 = vmul.f32 %v1778_v15, %v1500_v32 }
 0x132   :  { %v281_v54 = vpop.permute.xlu1 %280  ;;  %v1752_v56 = vpop.permute.xlu0 %347 }
 0x134   :  { %664 = vrot.lane.b32.xlu1 %v599_v60, %s1397_s6  ;;  %666 = vrot.lane.b32.xlu0 %v600_v61, %s1397_s6  ;;  %v1812_v60 = vstv %s166_s10 }
 0x136   :  { %v1760_v0 = vpop.permute.xlu1 %349  ;;  %v1762_v1 = vpop.permute.xlu0 %351 }
 0x138   :  { %668 = vrot.lane.b32.xlu1 %v601_v4, %s1397_s6  ;;  %670 = vrot.lane.b32.xlu0 %v602_v5, %s1397_s6  ;;  %v757_v5 = vmul.f32 %v1778_v15, %v1617_v28 }
 0x13a   :  { %v1770_v7 = vpop.permute.xlu1 %353  ;;  %v1772_v8 = vpop.permute.xlu0 %355 }
 0x13c   :  { %672 = vrot.lane.b32.xlu1 %v603_v11, %s1397_s6  ;;  %674 = vrot.lane.b32.xlu0 %v604_v12, %s1397_s6  ;;  %v758_v11 = vmul.f32 %v1778_v15, %v1504_v34  ;;  %v215_v12 = vmul.f32 %v1812_v60, %v1564_v62 }
 0x13e   :  { %v1782_v16 = vpop.permute.xlu1 %357  ;;  %v1784_v19 = vpop.permute.xlu0 %359 }
 0x140   :  { %676 = vrot.lane.b32.xlu1 %v605_v20, %s1397_s6  ;;  %800 = vrot.lane.b32.xlu0 %v752_v26, %s1396_s4  ;;  %v312_v20 = vadd.f32 %v279_v48, %v215_v12 }
 0x142   :  { %v1792_v27 = vpop.permute.xlu1 %361  ;;  %v1794_v35 = vpop.permute.xlu0 %363 }
 0x143   :  { %2362 = vst [vmem:[#allocation20_spill] sm:$0xff] %v1792_v27  ;;  %2363 = vst [vmem:[#allocation21_spill] sm:$0xff] %v1794_v35  ;;  %v773_v27 = vmul.f32 %v1778_v15, %v1564_v62 }
 0x144   :  { %802 = vrot.lane.b32.xlu1 %v753_v37, %s1396_s4  ;;  %804 = vrot.lane.b32.xlu0 %v754_v42, %s1396_s4  ;;  %v759_v42 = vmul.f32 %v1778_v15, %v1506_v36 }
 0x146   :  { %v1802_v3 = vpop.permute.xlu1 %365  ;;  %v1804_v44 = vpop.permute.xlu0 %367 }
 0x147   :  { %2364 = vst [vmem:[#allocation22_spill] sm:$0xff] %v1802_v3  ;;  %2365 = vst [vmem:[#allocation23_spill] sm:$0xff] %v1804_v44  ;;  %v767_v44 = vmul.f32 %v1778_v15, %v1542_v53  ;;  %v769_v3 = vmul.f32 %v1778_v15, %v1649_v52 }
 0x148   :  { %806 = vrot.lane.b32.xlu1 %v755_v50, %s1396_s4  ;;  %808 = vrot.lane.b32.xlu0 %v756_v51, %s1396_s4  ;;  %v760_v50 = vmul.f32 %v1778_v15, %v1623_v33  ;;  %v1832_v51 = vstv %s1289_s11 }
 0x14a   :  { %v1814_v61 = vpop.permute.xlu1 %369  ;;  %v1816_v4 = vpop.permute.xlu0 %371 }
 0x14b   :  { %2366 = vst [vmem:[#allocation24_spill] sm:$0xff] %v1814_v61  ;;  %2367 = vst [vmem:[#allocation25_spill] sm:$0xff] %v1816_v4  ;;  %v216_v4 = vmul.f32 %v1812_v60, %v1566_v63 }
 0x14c   :  { %810 = vrot.lane.b32.xlu1 %v757_v5, %s1396_s4  ;;  %812 = vrot.lane.b32.xlu0 %v758_v11, %s1396_s4  ;;  %v412_v5 = vmul.f32 %v1832_v51, %v1483_v23 }
 0x14d   :  { %v313_v48 = vadd.f32 %v281_v54, %v216_v4  ;;  %v413_v54 = vmul.f32 %v1832_v51, %v1494_v29  ;;  %v414_v4 = vmul.f32 %v1832_v51, %v1607_v21 }
 0x14e   :  { %v1826_v26 = vpop.permute.xlu1 %373  ;;  %v376_v37 = vpop.permute.xlu0 %375 }
 0x14f   :  { %2368 = vst [vmem:[#allocation26_spill] sm:$0xff] %v1826_v26  ;;  %v1836_v46 = vadd.f32 %v376_v37, %v312_v20  ;;  %v761_v26 = vmul.f32 %v1778_v15, %v1518_v41 }
 0x150   :  { %814 = vrot.lane.b32.xlu1 %v759_v42, %s1396_s4  ;;  %816 = vrot.lane.b32.xlu0 %v760_v50, %s1396_s4  ;;  %v763_v50 = vmul.f32 %v1778_v15, %v1633_v40 }
 0x151   :  { %2369 = vst [vmem:[#allocation27_spill] sm:$0xff] %v1836_v46  ;;  %v765_v46 = vmul.f32 %v1778_v15, %v1532_v49 }
 0x152   :  { %v378_v11 = vpop.permute.xlu1 %377  ;;  %v486_v12 = vpop.permute.xlu0 %485 }
 0x153   :  { %v1846_v61 = vadd.f32 %v378_v11, %v313_v48  ;;  %v1848_v20 = vadd.f32 %v486_v12, %v412_v5  ;;  %v764_v48 = vmul.f32 %v1778_v15, %v1530_v47 }
 0x154   :  { %818 = vrot.lane.b32.xlu1 %v761_v26, %s1396_s4  ;;  %820 = vrot.lane.b32.xlu0 %v762_v39, %s1396_s4  ;;  %v415_v39 = vmul.f32 %v1832_v51, %v1485_v25  ;;  %v416_v26 = vmul.f32 %v1832_v51, %v1500_v32 }
 0x155   :  { %2370 = vst [vmem:[#allocation28_spill] sm:$0xff] %v1846_v61 }
 0x156   :  { %v488_v37 = vpop.permute.xlu1 %487  ;;  %v490_v42 = vpop.permute.xlu0 %489 }
 0x157   :  { %v1860_v5 = vadd.f32 %v488_v37, %v413_v54  ;;  %v1862_v11 = vadd.f32 %v490_v42, %v414_v4  ;;  %v766_v54 = vmul.f32 %v1778_v15, %v1639_v45  ;;  %v417_v42 = vmul.f32 %v1832_v51, %v1617_v28 }
 0x158   :  { %822 = vrot.lane.b32.xlu1 %v763_v50, %s1396_s4  ;;  %824 = vrot.lane.b32.xlu0 %v764_v48, %s1396_s4  ;;  %v418_v50 = vmul.f32 %v1832_v51, %v1504_v34 }
 0x15a   :  { %v492_v12 = vpop.permute.xlu1 %491  ;;  %v494_v61 = vpop.permute.xlu0 %493 }
 0x15b   :  { %v1874_v4 = vadd.f32 %v492_v12, %v415_v39  ;;  %v1876_v37 = vadd.f32 %v494_v61, %v416_v26  ;;  %v768_v39 = vmul.f32 %v1778_v15, %v1544_v55  ;;  %v420_v12 = vmul.f32 %v1832_v51, %v1623_v33 }
 0x15c   :  { %826 = vrot.lane.b32.xlu1 %v765_v46, %s1396_s4  ;;  %828 = vrot.lane.b32.xlu0 %v766_v54, %s1396_s4  ;;  %v419_v46 = vmul.f32 %v1832_v51, %v1506_v36 }
 0x15e   :  { %v496_v48 = vpop.permute.xlu1 %495  ;;  %v498_v38 = vpop.permute.xlu0 %497 }
 0x15f   :  { %v1888_v61 = vadd.f32 %v496_v48, %v417_v42  ;;  %v1890_v26 = vadd.f32 %v498_v38, %v418_v50  ;;  %v770_v42 = vmul.f32 %v1778_v15, %v1554_v58  ;;  %v422_v48 = vmul.f32 %v1832_v51, %v1520_v43 }
 0x160   :  { %830 = vrot.lane.b32.xlu1 %v767_v44, %s1396_s4  ;;  %832 = vrot.lane.b32.xlu0 %v768_v39, %s1396_s4  ;;  %v421_v44 = vmul.f32 %v1832_v51, %v1518_v41 }
 0x162   :  { %v500_v54 = vpop.permute.xlu1 %499  ;;  %v502_v31 = vpop.permute.xlu0 %501 }
 0x163   :  { %v1902_v38 = vadd.f32 %v500_v54, %v419_v46  ;;  %v1904_v50 = vadd.f32 %v502_v31, %v420_v12  ;;  %v772_v31 = vmul.f32 %v1778_v15, %v1655_v57  ;;  %v424_v54 = vmul.f32 %v1832_v51, %v1530_v47 }
 0x164   :  { %834 = vrot.lane.b32.xlu1 %v769_v3, %s1396_s4  ;;  %836 = vrot.lane.b32.xlu0 %v770_v42, %s1396_s4  ;;  %v423_v3 = vmul.f32 %v1832_v51, %v1633_v40 }
 0x166   :  { %v504_v39 = vpop.permute.xlu1 %503  ;;  %v506_v35 = vpop.permute.xlu0 %505 }
 0x167   :  { %v1916_v46 = vadd.f32 %v504_v39, %v421_v44  ;;  %v1918_v12 = vadd.f32 %v506_v35, %v422_v48  ;;  %v774_v44 = vmul.f32 %v1778_v15, %v1566_v63  ;;  %v425_v39 = vmul.f32 %v1832_v51, %v1532_v49 }
 0x168   :  { %838 = vrot.lane.b32.xlu1 %v771_v30, %s1396_s4  ;;  %840 = vrot.lane.b32.xlu0 %v772_v31, %s1396_s4  ;;  %v1934_v30 = vstv %s1294_s12  ;;  %v426_v31 = vmul.f32 %v1832_v51, %v1639_v45 }
 0x169   :  { %2371 = vst [vmem:[#allocation29_spill] sm:$0xff] %v1918_v12 }
 0x16a   :  { %v508_v42 = vpop.permute.xlu1 %507  ;;  %v510_v24 = vpop.permute.xlu0 %509 }
 0x16b   :  { %v1930_v35 = vadd.f32 %v508_v42, %v423_v3  ;;  %v1932_v48 = vadd.f32 %v510_v24, %v424_v54  ;;  %v775_v3 = vmul.f32 %v1778_v15, %v1665_v2  ;;  %v897_v24 = vmul.f32 %v1934_v30, %v1483_v23 }
 0x16c   :  { %842 = vrot.lane.b32.xlu1 %v773_v27, %s1396_s4  ;;  %844 = vrot.lane.b32.xlu0 %v774_v44, %s1396_s4  ;;  %v427_v27 = vmul.f32 %v1832_v51, %v1542_v53  ;;  %v428_v44 = vmul.f32 %v1832_v51, %v1544_v55  ;;  %v898_v15 = vmul.f32 %v1934_v30, %v1494_v29 }
 0x16d   :  { %2372 = vst [vmem:[#allocation30_spill] sm:$0xff] %v1930_v35  ;;  %2373 = vst [vmem:[#allocation31_spill] sm:$0xff] %v1932_v48 }
 0x16e   :  { %v512_v22 = vpop.permute.xlu1 %511  ;;  %v514_v12 = vpop.permute.xlu0 %513 }
 0x16f   :  { %v1946_v54 = vadd.f32 %v512_v22, %v425_v39  ;;  %v1948_v42 = vadd.f32 %v514_v12, %v426_v31  ;;  %v899_v22 = vmul.f32 %v1934_v30, %v1607_v21  ;;  %v429_v31 = vmul.f32 %v1832_v51, %v1649_v52 }
 0x170   :  { %846 = vrot.lane.b32.xlu1 %v775_v3, %s1396_s4  ;;  %945 = vrot.lane.b32.xlu0 %v897_v24, %s1397_s6  ;;  %v430_v3 = vmul.f32 %v1832_v51, %v1554_v58  ;;  %v901_v21 = vmul.f32 %v1934_v30, %v1500_v32 }
 0x171   :  { %2374 = vst [vmem:[#allocation32_spill] sm:$0xff] %v1946_v54  ;;  %2375 = vst [vmem:[#allocation33_spill] sm:$0xff] %v1948_v42  ;;  %v900_v54 = vmul.f32 %v1934_v30, %v1485_v25 }
 0x172   :  { %v516_v48 = vpop.permute.xlu1 %515  ;;  %v518_v35 = vpop.permute.xlu0 %517 }
 0x173   :  { %v1960_v12 = vadd.f32 %v516_v48, %v427_v27  ;;  %v1962_v39 = vadd.f32 %v518_v35, %v428_v44  ;;  %v431_v27 = vmul.f32 %v1832_v51, %v1556_v59  ;;  %v432_v44 = vmul.f32 %v1832_v51, %v1655_v57 }
 0x174   :  { %947 = vrot.lane.b32.xlu1 %v898_v15, %s1397_s6  ;;  %949 = vrot.lane.b32.xlu0 %v899_v22, %s1397_s6 }
 0x175   :  { %2376 = vst [vmem:[#allocation34_spill] sm:$0xff] %v1962_v39  ;;  %v902_v39 = vmul.f32 %v1934_v30, %v1617_v28  ;;  %v904_v28 = vmul.f32 %v1934_v30, %v1506_v36 }
 0x176   :  { %v520_v24 = vpop.permute.xlu1 %519  ;;  %v522_v42 = vpop.permute.xlu0 %521 }
 0x177   :  { %v1974_v35 = vadd.f32 %v520_v24, %v429_v31  ;;  %v1976_v48 = vadd.f32 %v522_v42, %v430_v3  ;;  %v903_v31 = vmul.f32 %v1934_v30, %v1504_v34  ;;  %v434_v24 = vmul.f32 %v1832_v51, %v1566_v63 }
 0x178   :  { %951 = vrot.lane.b32.xlu1 %v900_v54, %s1397_s6  ;;  %953 = vrot.lane.b32.xlu0 %v901_v21, %s1397_s6  ;;  %v433_v54 = vmul.f32 %v1832_v51, %v1564_v62 }
 0x179   :  { %2377 = vst [vmem:[#allocation35_spill] sm:$0xff] %v1976_v48 }
 0x17a   :  { %v524_v15 = vpop.permute.xlu1 %523  ;;  %v526_v22 = vpop.permute.xlu0 %525 }
 0x17b   :  { %v1988_v42 = vadd.f32 %v524_v15, %v431_v27  ;;  %v1990_v3 = vadd.f32 %v526_v22, %v432_v44  ;;  %v905_v27 = vmul.f32 %v1934_v30, %v1623_v33  ;;  %v201_v22 = vmul.f32 %v1812_v60, %v1483_v23 }
 0x17c   :  { %955 = vrot.lane.b32.xlu1 %v902_v39, %s1397_s6  ;;  %957 = vrot.lane.b32.xlu0 %v903_v31, %s1397_s6  ;;  %v435_v39 = vmul.f32 %v1832_v51, %v1665_v2  ;;  %v202_v31 = vmul.f32 %v1812_v60, %v1494_v29  ;;  %v906_v33 = vmul.f32 %v1934_v30, %v1518_v41 }
 0x17d   :  { %2378 = vst [vmem:[#allocation36_spill] sm:$0xff] %v1988_v42  ;;  %2379 = vst [vmem:[#allocation37_spill] sm:$0xff] %v1990_v3  ;;  %v298_v51 = vadd.f32 %v1676_v6, %v201_v22  ;;  %v203_v23 = vmul.f32 %v1812_v60, %v1485_v25  ;;  %v909_v6 = vmul.f32 %v1934_v30, %v1530_v47 }
 0x17e   :  { %v528_v21 = vpop.permute.xlu1 %527  ;;  %v530_v48 = vpop.permute.xlu0 %529 }
 0x17f   :  { %v2002_v44 = vadd.f32 %v528_v21, %v433_v54  ;;  %v2004_v15 = vadd.f32 %v530_v48, %v434_v24  ;;  %v907_v48 = vmul.f32 %v1934_v30, %v1520_v43  ;;  %v299_v21 = vadd.f32 %v1684_v9, %v202_v31 }
 0x180   :  { %959 = vrot.lane.b32.xlu1 %v904_v28, %s1397_s6  ;;  %961 = vrot.lane.b32.xlu0 %v905_v27, %s1397_s6  ;;  %v395_v29 = vadd.f32 %v1752_v56, %v298_v51  ;;  %v2036_v9 = vstv %s2352_s1  ;;  %v300_v56 = vadd.f32 %v1686_v10, %v203_v23  ;;  %v910_v31 = vmul.f32 %v1934_v30, %v1532_v49  ;;  %s1292_s1 = sld [smem:[#allocation4 + $0x6]] }
 0x181   :  { %v396_v28 = vadd.f32 %v1760_v0, %v299_v21  ;;  %v204_v0 = vmul.f32 %v1812_v60, %v1500_v32  ;;  %v911_v32 = vmul.f32 %v1934_v30, %v1639_v45  ;;  %v205_v45 = vmul.f32 %v1812_v60, %v1504_v34 }
 0x182   :  { %v532_v3 = vpop.permute.xlu1 %531  ;;  %v631_v42 = vpop.permute.xlu0 %630  ;;  %v397_v10 = vadd.f32 %v1762_v1, %v300_v56  ;;  %v206_v1 = vmul.f32 %v1812_v60, %v1506_v36 }
 0x183   :  { %v2018_v54 = vadd.f32 %v532_v3, %v435_v39  ;;  %v702_v24 = vadd.f32 %v631_v42, %v1848_v20  ;;  %v908_v20 = vmul.f32 %v1934_v30, %v1633_v40 }
 0x184   :  { %963 = vrot.lane.b32.xlu1 %v906_v33, %s1397_s6  ;;  %965 = vrot.lane.b32.xlu0 %v907_v48, %s1397_s6 }
 0x185   :  { %v1083_v40 = vrot.slane %v702_v24, 1 }
 0x186   :  { %v633_v27 = vpop.permute.xlu1 %632  ;;  %v635_v3 = vpop.permute.xlu0 %634 }
 0x187   :  { %v703_v42 = vadd.f32 %v633_v27, %v1860_v5  ;;  %v704_v25 = vadd.f32 %v635_v3, %v1862_v11  ;;  %v1042_v5 = vadd.f32 %v2036_v9, %v395_v29  ;;  %v1043_v11 = vadd.f32 %v2036_v9, %v396_v28 }
 0x188   :  { %967 = vrot.lane.b32.xlu1 %v908_v20, %s1397_s6  ;;  %969 = vrot.lane.b32.xlu0 %v909_v6, %s1397_s6  ;;  %v301_v27 = vadd.f32 %v1694_v13, %v204_v0  ;;  %v302_v0 = vadd.f32 %v1696_v14, %v205_v45 }
 0x189   :  { %v1084_v39 = vrot.slane %v703_v42, 1  ;;  %v1086_v22 = vrot.slane %v704_v25, 1  ;;  %v912_v42 = vmul.f32 %v1934_v30, %v1542_v53  ;;  %v913_v25 = vmul.f32 %v1934_v30, %v1544_v55 }
 0x18a   :  { %v637_v33 = vpop.permute.xlu1 %636  ;;  %v639_v48 = vpop.permute.xlu0 %638  ;;  %v398_v13 = vadd.f32 %v1770_v7, %v301_v27  ;;  %v207_v7 = vmul.f32 %v1812_v60, %v1518_v41 }
 0x18b   :  { %v1085_v51 = vsel %vm1082_vm3, %v1083_v40, %v1084_v39  ;;  %v1087_v24 = vsel %vm1082_vm3, %v1084_v39, %v1086_v22  ;;  %v705_v21 = vadd.f32 %v637_v33, %v1874_v4  ;;  %v706_v23 = vadd.f32 %v639_v48, %v1876_v37 }
 0x18c   :  { %v2057_v29 = vadd.f32 %v1085_v51, %v1042_v5  ;;  %v2059_v28 = vadd.f32 %v1087_v24, %v1043_v11  ;;  %971 = vrot.lane.b32.xlu1 %v910_v31, %s1397_s6  ;;  %973 = vrot.lane.b32.xlu0 %v911_v32, %s1397_s6  ;;  %v1044_v37 = vadd.f32 %v2036_v9, %v397_v10 }
 0x18d   :  { %v1088_v3 = vrot.slane %v705_v21, 1  ;;  %v1089_v4 = vrot.slane %v706_v23, 1  ;;  %v303_v40 = vadd.f32 %v1704_v17, %v206_v1  ;;  %v914_v31 = vmul.f32 %v1934_v30, %v1649_v52 }
 0x18e   :  { %v641_v20 = vpop.permute.xlu1 %640  ;;  %v643_v6 = vpop.permute.xlu0 %642  ;;  %v915_v11 = vmul.f32 %v1934_v30, %v1554_v58  ;;  %v304_v48 = vadd.f32 %v1706_v18, %v207_v7  ;;  %v208_v52 = vmul.f32 %v1812_v60, %v1520_v43  ;;  %v916_v24 = vmul.f32 %v1934_v30, %v1556_v59 }
 0x18f   :  { %v1090_v56 = vsel %vm1082_vm3, %v1088_v3, %v1089_v4  ;;  %v707_v34 = vadd.f32 %v641_v20, %v1888_v61  ;;  %v708_v36 = vadd.f32 %v643_v6, %v1890_v26  ;;  %v1045_v61 = vadd.f32 %v2036_v9, %v398_v13  ;;  %v2380_v3 = vld [vmem:[#allocation29_spill] sm:$0xff] }
 0x190   :  { %v2078_v39 = vadd.f32 %v1090_v56, %v1044_v37  ;;  %975 = vrot.lane.b32.xlu1 %v912_v42, %s1397_s6  ;;  %977 = vrot.lane.b32.xlu0 %v913_v25, %s1397_s6  ;;  %v399_v26 = vadd.f32 %v1772_v8, %v302_v0  ;;  %v400_v14 = vadd.f32 %v1782_v16, %v303_v40  ;;  %v2381_v37 = vld [vmem:[#allocation13_spill] sm:$0xff]  ;;  %v2382_v56 = vld [vmem:[#allocation20_spill] sm:$0xff] }
 0x191   :  { %v1091_v22 = vrot.slane %v707_v34, 1  ;;  %v1093_v8 = vrot.slane %v708_v36, 1  ;;  %v401_v18 = vadd.f32 %v1784_v19, %v304_v48  ;;  %v917_v23 = vmul.f32 %v1934_v30, %v1655_v57  ;;  %v2388_v48 = vld [vmem:[#allocation22_spill] sm:$0xff] }
 0x192   :  { %v645_v17 = vpop.permute.xlu1 %644  ;;  %v647_v5 = vpop.permute.xlu0 %646  ;;  %v305_v13 = vadd.f32 %v2381_v37, %v208_v52  ;;  %v209_v57 = vmul.f32 %v1812_v60, %v1530_v47  ;;  %v210_v19 = vmul.f32 %v1812_v60, %v1532_v49  ;;  %v918_v40 = vmul.f32 %v1934_v30, %v1564_v62  ;;  %v2383_v47 = vld [vmem:[#allocation30_spill] sm:$0xff] }
 0x193   :  { %v1092_v10 = vsel %vm1082_vm3, %v1089_v4, %v1091_v22  ;;  %v709_v33 = vadd.f32 %v645_v17, %v1902_v38  ;;  %v710_v41 = vadd.f32 %v647_v5, %v1904_v50  ;;  %v1046_v38 = vadd.f32 %v2036_v9, %v399_v26  ;;  %v2385_v26 = vld [vmem:[#allocation14_spill] sm:$0xff]  ;;  %v2386_v17 = vld [vmem:[#allocation15_spill] sm:$0xff] }
 0x194   :  { %v2097_v32 = vadd.f32 %v1092_v10, %v1045_v61  ;;  %979 = vrot.lane.b32.xlu1 %v914_v31, %s1397_s6  ;;  %981 = vrot.lane.b32.xlu0 %v915_v11, %s1397_s6  ;;  %v1047_v50 = vadd.f32 %v2036_v9, %v400_v14  ;;  %v1048_v25 = vadd.f32 %v2036_v9, %v401_v18  ;;  %v2384_v61 = vld [vmem:[#allocation31_spill] sm:$0xff]  ;;  %v2390_v18 = vld [vmem:[#allocation33_spill] sm:$0xff] }
 0x195   :  { %v1094_v16 = vrot.slane %v709_v33, 1  ;;  %v1096_v51 = vrot.slane %v710_v41, 1  ;;  %v402_v34 = vadd.f32 %v2382_v56, %v305_v13  ;;  %v919_v7 = vmul.f32 %v1934_v30, %v1566_v63  ;;  %v2387_v33 = vld [vmem:[#allocation21_spill] sm:$0xff] }
 0x196   :  { %v649_v21 = vpop.permute.xlu1 %648  ;;  %v651_v43 = vpop.permute.xlu0 %650  ;;  %v306_v14 = vadd.f32 %v2385_v26, %v209_v57  ;;  %v307_v5 = vadd.f32 %v2386_v17, %v210_v19  ;;  %v211_v62 = vmul.f32 %v1812_v60, %v1542_v53 }
 0x197   :  { %v1095_v27 = vsel %vm1082_vm3, %v1093_v8, %v1094_v16  ;;  %v1097_v45 = vsel %vm1082_vm3, %v1094_v16, %v1096_v51  ;;  %v711_v1 = vadd.f32 %v649_v21, %v1916_v46  ;;  %v712_v4 = vadd.f32 %v651_v43, %v2380_v3  ;;  %v2391_v43 = vld [vmem:[#allocation16_spill] sm:$0xff] }
 0x198   :  { %v2113_v20 = vadd.f32 %v1095_v27, %v1046_v38  ;;  %v2115_v6 = vadd.f32 %v1097_v45, %v1047_v50  ;;  %983 = vrot.lane.b32.xlu1 %v916_v24, %s1397_s6  ;;  %985 = vrot.lane.b32.xlu0 %v917_v23, %s1397_s6  ;;  %v1049_v10 = vadd.f32 %v2036_v9, %v402_v34  ;;  %v2389_v38 = vld [vmem:[#allocation32_spill] sm:$0xff]  ;;  %v2394_v34 = vld [vmem:[#allocation17_spill] sm:$0xff] }
 0x199   :  { %v1098_v42 = vrot.slane %v711_v1, 1  ;;  %v1099_v46 = vrot.slane %v712_v4, 1  ;;  %v403_v41 = vadd.f32 %v2387_v33, %v306_v14  ;;  %v404_v52 = vadd.f32 %v2388_v48, %v307_v5  ;;  %v2392_v4 = vld [vmem:[#allocation23_spill] sm:$0xff] }
 0x19a   :  { %v653_v36 = vpop.permute.xlu1 %652  ;;  %v655_v0 = vpop.permute.xlu0 %654  ;;  %v920_v51 = vmul.f32 %v1934_v30, %v1665_v2  ;;  %v308_v53 = vadd.f32 %v2391_v43, %v211_v62  ;;  %v212_v3 = vmul.f32 %v1812_v60, %v1544_v55  ;;  %v2396_v5 = vld [vmem:[#allocation35_spill] sm:$0xff] }
 0x19b   :  { %v1100_v22 = vsel %vm1082_vm3, %v1098_v42, %v1099_v46  ;;  %v713_v31 = vadd.f32 %v653_v36, %v2383_v47  ;;  %v714_v49 = vadd.f32 %v655_v0, %v2384_v61  ;;  %v1050_v2 = vadd.f32 %v2036_v9, %v403_v41  ;;  %v2395_v61 = vld [vmem:[#allocation24_spill] sm:$0xff]  ;;  %v2398_v33 = vld [vmem:[#allocation19_spill] sm:$0xff] }
 0x19c   :  { %v2134_v11 = vadd.f32 %v1100_v22, %v1048_v25  ;;  %987 = vrot.lane.b32.xlu1 %v918_v40, %s1397_s6  ;;  %989 = vrot.lane.b32.xlu0 %v919_v7, %s1397_s6  ;;  %v1051_v30 = vadd.f32 %v2036_v9, %v404_v52  ;;  %v405_v37 = vadd.f32 %v2392_v4, %v308_v53  ;;  %v2393_v25 = vld [vmem:[#allocation34_spill] sm:$0xff] }
 0x19d   :  { %v1101_v63 = vrot.slane %v713_v31, 1  ;;  %v1103_v27 = vrot.slane %v714_v49, 1  ;;  %v309_v36 = vadd.f32 %v2394_v34, %v212_v3  ;;  %v213_v22 = vmul.f32 %v1812_v60, %v1554_v58 }
 0x19e   :  { %v657_v8 = vpop.permute.xlu1 %656  ;;  %v659_v16 = vpop.permute.xlu0 %658  ;;  %v214_v47 = vmul.f32 %v1812_v60, %v1556_v59  ;;  %v1052_v31 = vadd.f32 %v2036_v9, %v405_v37  ;;  %v2399_v60 = vld [vmem:[#allocation25_spill] sm:$0xff] }
 0x19f   :  { %v1102_v24 = vsel %vm1082_vm3, %v1099_v46, %v1101_v63  ;;  %v715_v50 = vadd.f32 %v657_v8, %v2389_v38  ;;  %v716_v21 = vadd.f32 %v659_v16, %v2390_v18  ;;  %v2397_v63 = vld [vmem:[#allocation18_spill] sm:$0xff]  ;;  %v2402_v18 = vld [vmem:[#allocation37_spill] sm:$0xff] }
 0x1a0   :  { %v2149_v23 = vadd.f32 %v1102_v24, %v1049_v10  ;;  %991 = vrot.lane.b32.xlu1 %v920_v51, %s1397_s6  ;;  %v310_v10 = vadd.f32 %v2397_v63, %v213_v22  ;;  %v311_v41 = vadd.f32 %v2398_v33, %v214_v47  ;;  %v2400_v8 = vld [vmem:[#allocation26_spill] sm:$0xff] }
 0x1a1   :  { %v1104_v45 = vrot.slane %v715_v50, 1  ;;  %v1106_v1 = vrot.slane %v716_v21, 1 }
 0x1a2   :  { %v661_v13 = vpop.permute.xlu1 %660  ;;  %v663_v57 = vpop.permute.xlu0 %662  ;;  %v407_v52 = vadd.f32 %v2399_v60, %v310_v10  ;;  %v408_v16 = vadd.f32 %v2400_v8, %v311_v41 }
 0x1a3   :  { %v1105_v19 = vsel %vm1082_vm3, %v1103_v27, %v1104_v45  ;;  %v1107_v42 = vsel %vm1082_vm3, %v1104_v45, %v1106_v1  ;;  %v717_v46 = vadd.f32 %v661_v13, %v1960_v12  ;;  %v718_v56 = vadd.f32 %v663_v57, %v2393_v25 }
 0x1a4   :  { %v2162_v0 = vadd.f32 %v1105_v19, %v1050_v2  ;;  %v2164_v55 = vadd.f32 %v1107_v42, %v1051_v30  ;;  %v406_v12 = vadd.f32 %v2395_v61, %v309_v36  ;;  %v1054_v1 = vadd.f32 %v2036_v9, %v407_v52 }
 0x1a5   :  { %v1108_v40 = vrot.slane %v717_v46, 1  ;;  %v1109_v7 = vrot.slane %v718_v56, 1  ;;  %v1055_v3 = vadd.f32 %v2036_v9, %v408_v16  ;;  %v2403_v56 = vld [vmem:[#allocation27_spill] sm:$0xff] }
 0x1a6   :  { %v665_v49 = vpop.permute.xlu1 %664  ;;  %v667_v26 = vpop.permute.xlu0 %666  ;;  %v1053_v59 = vadd.f32 %v2036_v9, %v406_v12  ;;  %v1056_v34 = vadd.f32 %v2036_v9, %v2403_v56 }
 0x1a7   :  { %v1110_v14 = vsel %vm1082_vm3, %v1108_v40, %v1109_v7  ;;  %v719_v17 = vadd.f32 %v665_v49, %v1974_v35  ;;  %v720_v62 = vadd.f32 %v667_v26, %v2396_v5  ;;  %v2401_v35 = vld [vmem:[#allocation36_spill] sm:$0xff] }
 0x1a8   :  { %v2177_v58 = vadd.f32 %v1110_v14, %v1052_v31  ;;  %v2404_v31 = vld [vmem:[#allocation28_spill] sm:$0xff] }
 0x1a9   :  { %v1111_v48 = vrot.slane %v719_v17, 1  ;;  %v1113_v53 = vrot.slane %v720_v62, 1 }
 0x1aa   :  { %v669_v51 = vpop.permute.xlu1 %668  ;;  %v671_v24 = vpop.permute.xlu0 %670 }
 0x1ab   :  { %v1112_v38 = vsel %vm1082_vm3, %v1109_v7, %v1111_v48  ;;  %v721_v50 = vadd.f32 %v669_v51, %v2401_v35  ;;  %v722_v21 = vadd.f32 %v671_v24, %v2402_v18  ;;  %v1304_v18 = vld [vmem:[#allocation2] sm:$0xff] }
 0x1ac   :  { %v2185_v43 = vadd.f32 %v1112_v38, %v1053_v59  ;;  %v2238_v38 = vstv %s1292_s1 }
 0x1ad   :  { %v1114_v27 = vrot.slane %v721_v50, 1  ;;  %v1116_v45 = vrot.slane %v722_v21, 1  ;;  %v727_v21 = vmul.f32 %v1304_v18, %v2238_v38  ;;  %v1309_v18 = vld [vmem:[#allocation2 + $0x28] sm:$0x3] }
 0x1ae   :  { %v673_v2 = vpop.permute.xlu1 %672  ;;  %v675_v30 = vpop.permute.xlu0 %674 }
 0x1af   :  { %v1115_v4 = vsel %vm1082_vm3, %v1113_v53, %v1114_v27  ;;  %v1117_v37 = vsel %vm1082_vm3, %v1114_v27, %v1116_v45  ;;  %v723_v13 = vadd.f32 %v673_v2, %v2002_v44  ;;  %v724_v57 = vadd.f32 %v675_v30, %v2004_v15  ;;  %v1306_v2 = vld [vmem:[#allocation2 + $0x10] sm:$0x3] }
 0x1b0   :  { %v2193_v19 = vadd.f32 %v1115_v4, %v1054_v1  ;;  %v2195_v42 = vadd.f32 %v1117_v37, %v1055_v3  ;;  %v1057_v15 = vadd.f32 %v2036_v9, %v2404_v31  ;;  %v1305_v1 = vld [vmem:[#allocation2 + $0x8] sm:$0xff]  ;;  %v729_v30 = vmul.f32 %v1306_v2, %v2238_v38 }
 0x1b1   :  { %v1118_v46 = vrot.slane %v723_v13, 1  ;;  %v1119_v25 = vrot.slane %v724_v57, 1  ;;  %v728_v3 = vmul.f32 %v1305_v1, %v2238_v38  ;;  %v1307_v57 = vld [vmem:[#allocation2 + $0x18] sm:$0xff] }
 0x1b2   :  { %v677_v36 = vpop.permute.xlu1 %676  ;;  %v801_v40 = vpop.permute.xlu0 %800 }
 0x1b3   :  { %v1120_v7 = vsel %vm1082_vm3, %v1118_v46, %v1119_v25  ;;  %v725_v22 = vadd.f32 %v677_v36, %v2018_v54  ;;  %v872_v45 = vadd.f32 %v801_v40, %v727_v21  ;;  %v730_v46 = vmul.f32 %v1307_v57, %v2238_v38  ;;  %v1311_v57 = vld [vmem:[#allocation2 + $0x38] sm:$0xff] }
 0x1b4   :  { %v2201_v47 = vadd.f32 %v1120_v7, %v1056_v34  ;;  %v1308_v34 = vld [vmem:[#allocation2 + $0x20] sm:$0xff] }
 0x1b5   :  { %v1121_v44 = vrot.slane %v725_v22, 1  ;;  %v731_v36 = vmul.f32 %v1308_v34, %v2238_v38 }
 0x1b6   :  { %v803_v61 = vpop.permute.xlu1 %802  ;;  %v805_v12 = vpop.permute.xlu0 %804 }
 0x1b7   :  { %v1122_v49 = vsel %vm1082_vm3, %v1119_v25, %v1121_v44  ;;  %v873_v4 = vadd.f32 %v803_v61, %v728_v3  ;;  %v874_v37 = vadd.f32 %v805_v12, %v729_v30  ;;  %v732_v61 = vmul.f32 %v1309_v18, %v2238_v38  ;;  %v1310_v30 = vld [vmem:[#allocation2 + $0x30] sm:$0xff] }
 0x1b8   :  { %v2206_v26 = vadd.f32 %v1122_v49, %v1057_v15 }
 0x1ba   :  { %v807_v14 = vpop.permute.xlu1 %806  ;;  %v809_v17 = vpop.permute.xlu0 %808 }
 0x1bb   :  { %v875_v40 = vadd.f32 %v807_v14, %v730_v46  ;;  %v876_v44 = vadd.f32 %v809_v17, %v731_v36  ;;  %v734_v46 = vmul.f32 %v1311_v57, %v2238_v38 }
 0x1be   :  { %v811_v5 = vpop.permute.xlu1 %810  ;;  %v2208_v62 = vpop.permute.xlu0 %812 }
 0x1bf   :  { %v877_v17 = vadd.f32 %v811_v5, %v732_v61  ;;  %v1314_v61 = vld [vmem:[#allocation2 + $0x50] sm:$0xff] }
 0x1c2   :  { %v2210_v63 = vpop.permute.xlu1 %814  ;;  %v2212_v54 = vpop.permute.xlu0 %816 }
 0x1c6   :  { %v2214_v10 = vpop.permute.xlu1 %818  ;;  %v2216_v33 = vpop.permute.xlu0 %820 }
 0x1ca   :  { %v2218_v9 = vpop.permute.xlu1 %822  ;;  %v2220_v41 = vpop.permute.xlu0 %824 }
 0x1ce   :  { %v2222_v48 = vpop.permute.xlu1 %826  ;;  %v2224_v59 = vpop.permute.xlu0 %828 }
 0x1d2   :  { %v2226_v60 = vpop.permute.xlu1 %830  ;;  %v2228_v52 = vpop.permute.xlu0 %832 }
 0x1d6   :  { %v2230_v8 = vpop.permute.xlu1 %834  ;;  %v2232_v16 = vpop.permute.xlu0 %836 }
 0x1da   :  { %v2234_v51 = vpop.permute.xlu1 %838  ;;  %v2236_v24 = vpop.permute.xlu0 %840 }
 0x1de   :  { %v2240_v35 = vpop.permute.xlu1 %842  ;;  %v2242_v50 = vpop.permute.xlu0 %844 }
 0x1e2   :  { %v2245_v53 = vpop.permute.xlu1 %846  ;;  %v946_v27 = vpop.permute.xlu0 %945 }
 0x1e3   :  { %v1017_v13 = vadd.f32 %v946_v27, %v872_v45 }
 0x1e5   :  { %v1180_v31 = vrot.slane %v1017_v13, 2 }
 0x1e6   :  { %v948_v25 = vpop.permute.xlu1 %947  ;;  %v950_v56 = vpop.permute.xlu0 %949 }
 0x1e7   :  { %v1018_v7 = vadd.f32 %v948_v25, %v873_v4  ;;  %v1019_v22 = vadd.f32 %v950_v56, %v874_v37  ;;  %v733_v4 = vmul.f32 %v1310_v30, %v2238_v38 }
 0x1e9   :  { %v1181_v15 = vrot.slane %v1018_v7, 2  ;;  %v1183_v49 = vrot.slane %v1019_v22, 2  ;;  %v878_v34 = vadd.f32 %v2208_v62, %v733_v4  ;;  %v879_v22 = vadd.f32 %v2210_v63, %v734_v46 }
 0x1ea   :  { %v952_v12 = vpop.permute.xlu1 %951  ;;  %v954_v21 = vpop.permute.xlu0 %953 }
 0x1eb   :  { %v1182_v27 = vsel %vm1179_vm4, %v1180_v31, %v1181_v15  ;;  %v1184_v45 = vsel %vm1179_vm4, %v1181_v15, %v1183_v49  ;;  %v1020_v1 = vadd.f32 %v952_v12, %v875_v40  ;;  %v1021_v3 = vadd.f32 %v954_v21, %v876_v44  ;;  %v1313_v15 = vld [vmem:[#allocation2 + $0x48] sm:$0xff] }
 0x1ec   :  { %v1236_v2 = vadd.f32 %v1182_v27, %v2057_v29  ;;  %v1237_v14 = vadd.f32 %v1184_v45, %v2059_v28  ;;  %v1312_v29 = vld [vmem:[#allocation2 + $0x40] sm:$0x3]  ;;  %v736_v49 = vmul.f32 %v1313_v15, %v2238_v38  ;;  %v737_v12 = vmul.f32 %v1314_v61, %v2238_v38 }
 0x1ed   :  { %v1185_v37 = vrot.slane %v1020_v1, 2  ;;  %v1186_v13 = vrot.slane %v1021_v3, 2  ;;  %v735_v28 = vmul.f32 %v1312_v29, %v2238_v38 }
 0x1ee   :  { %1253 = vst.msk [vmem:[#allocation9] sm:$0xff] %vm1252_vm5, %v1236_v2  ;;  %1254 = vst.msk [vmem:[#allocation9 + $0x8] sm:$0xff] %vm1252_vm5, %v1237_v14  ;;  %v956_v25 = vpop.permute.xlu1 %955  ;;  %v958_v56 = vpop.permute.xlu0 %957  ;;  %v881_v63 = vadd.f32 %v2214_v10, %v736_v49  ;;  %v882_v45 = vadd.f32 %v2216_v33, %v737_v12  ;;  %v1315_v14 = vld [vmem:[#allocation2 + $0x58] sm:$0x3] }
 0x1ef   :  { %v1187_v5 = vsel %vm1179_vm4, %v1185_v37, %v1186_v13  ;;  %v1022_v36 = vadd.f32 %v956_v25, %v877_v17  ;;  %v880_v40 = vadd.f32 %v2212_v54, %v735_v28  ;;  %v1023_v31 = vadd.f32 %v958_v56, %v878_v34  ;;  %v1316_v25 = vld [vmem:[#allocation2 + $0x60] sm:$0xff]  ;;  %v1317_v28 = vld [vmem:[#allocation2 + $0x68] sm:$0xff] }
 0x1f0   :  { %v1238_v7 = vadd.f32 %v1187_v5, %v2078_v39  ;;  %v738_v17 = vmul.f32 %v1315_v14, %v2238_v38  ;;  %v739_v56 = vmul.f32 %v1316_v25, %v2238_v38  ;;  %v740_v5 = vmul.f32 %v1317_v28, %v2238_v38  ;;  %v1323_v25 = vld [vmem:[#allocation2 + $0x98] sm:$0xff]  ;;  %v1324_v28 = vld [vmem:[#allocation2 + $0xa0] sm:$0x3] }
 0x1f1   :  { %v1188_v44 = vrot.slane %v1022_v36, 2  ;;  %v1190_v1 = vrot.slane %v1023_v31, 2 }
 0x1f2   :  { %1255 = vst.msk [vmem:[#allocation9 + $0x10] sm:$0xff] %vm1252_vm5, %v1238_v7  ;;  %v960_v62 = vpop.permute.xlu1 %959  ;;  %v962_v18 = vpop.permute.xlu0 %961  ;;  %v883_v46 = vadd.f32 %v2218_v9, %v738_v17  ;;  %v885_v31 = vadd.f32 %v2222_v48, %v740_v5 }
 0x1f3   :  { %v1189_v21 = vsel %vm1179_vm4, %v1186_v13, %v1188_v44  ;;  %v1024_v27 = vadd.f32 %v960_v62, %v879_v22  ;;  %v1025_v39 = vadd.f32 %v962_v18, %v880_v40  ;;  %v1318_v22 = vld [vmem:[#allocation2 + $0x70] sm:$0x3]  ;;  %v1319_v18 = vld [vmem:[#allocation2 + $0x78] sm:$0xff] }
 0x1f4   :  { %v1239_v54 = vadd.f32 %v1189_v21, %v2097_v32  ;;  %v742_v61 = vmul.f32 %v1319_v18, %v2238_v38  ;;  %v1320_v21 = vld [vmem:[#allocation2 + $0x80] sm:$0xff] }
 0x1f5   :  { %v1191_v3 = vrot.slane %v1024_v27, 2  ;;  %v1193_v2 = vrot.slane %v1025_v39, 2  ;;  %v743_v27 = vmul.f32 %v1320_v21, %v2238_v38  ;;  %v1327_v21 = vld [vmem:[#allocation2 + $0xb8] sm:$0x3] }
 0x1f6   :  { %1256 = vst.msk [vmem:[#allocation9 + $0x18] sm:$0xff] %vm1252_vm5, %v1239_v54  ;;  %v964_v30 = vpop.permute.xlu1 %963  ;;  %v966_v4 = vpop.permute.xlu0 %965  ;;  %v887_v48 = vadd.f32 %v2226_v60, %v742_v61 }
 0x1f7   :  { %v1192_v37 = vsel %vm1179_vm4, %v1190_v1, %v1191_v3  ;;  %v1194_v13 = vsel %vm1179_vm4, %v1191_v3, %v1193_v2  ;;  %v1026_v57 = vadd.f32 %v964_v30, %v881_v63  ;;  %v1027_v10 = vadd.f32 %v966_v4, %v882_v45  ;;  %v1321_v2 = vld [vmem:[#allocation2 + $0x88] sm:$0x3] }
 0x1f8   :  { %v1240_v32 = vadd.f32 %v1192_v37, %v2113_v20  ;;  %v1241_v33 = vadd.f32 %v1194_v13, %v2115_v6  ;;  %v884_v20 = vadd.f32 %v2220_v41, %v739_v56  ;;  %v741_v6 = vmul.f32 %v1318_v22, %v2238_v38 }
 0x1f9   :  { %v1195_v34 = vrot.slane %v1026_v57, 2  ;;  %v1196_v29 = vrot.slane %v1027_v10, 2  ;;  %v888_v54 = vadd.f32 %v2228_v52, %v743_v27  ;;  %v744_v14 = vmul.f32 %v1321_v2, %v2238_v38  ;;  %v1322_v10 = vld [vmem:[#allocation2 + $0x90] sm:$0xff] }
 0x1fa   :  { %1257 = vst.msk [vmem:[#allocation9 + $0x20] sm:$0xff] %vm1252_vm5, %v1240_v32  ;;  %1258 = vst.msk [vmem:[#allocation9 + $0x28] sm:$0xff] %vm1252_vm5, %v1241_v33  ;;  %v968_v36 = vpop.permute.xlu1 %967  ;;  %v970_v7 = vpop.permute.xlu0 %969  ;;  %v886_v15 = vadd.f32 %v2224_v59, %v741_v6  ;;  %v745_v32 = vmul.f32 %v1322_v10, %v2238_v38  ;;  %v746_v56 = vmul.f32 %v1323_v25, %v2238_v38 }
 0x1fb   :  { %v1197_v9 = vsel %vm1179_vm4, %v1195_v34, %v1196_v29  ;;  %v1028_v40 = vadd.f32 %v968_v36, %v883_v46  ;;  %v1029_v62 = vadd.f32 %v970_v7, %v884_v20  ;;  %v889_v57 = vadd.f32 %v2230_v8, %v744_v14 }
 0x1fc   :  { %v1242_v44 = vadd.f32 %v1197_v9, %v2134_v11  ;;  %v891_v7 = vadd.f32 %v2234_v51, %v746_v56  ;;  %v1325_v9 = vld [vmem:[#allocation2 + $0xa8] sm:$0xff]  ;;  %v750_v27 = vmul.f32 %v1327_v21, %v2238_v38 }
 0x1fd   :  { %v1198_v49 = vrot.slane %v1028_v40, 2  ;;  %v1200_v45 = vrot.slane %v1029_v62, 2  ;;  %v748_v40 = vmul.f32 %v1325_v9, %v2238_v38 }
 0x1fe   :  { %1259 = vst.msk [vmem:[#allocation9 + $0x30] sm:$0xff] %vm1252_vm5, %v1242_v44  ;;  %v972_v41 = vpop.permute.xlu1 %971  ;;  %v974_v12 = vpop.permute.xlu0 %973 }
 0x1ff   :  { %v1199_v39 = vsel %vm1179_vm4, %v1196_v29, %v1198_v49  ;;  %v1030_v63 = vadd.f32 %v972_v41, %v885_v31  ;;  %v1031_v11 = vadd.f32 %v974_v12, %v886_v15  ;;  %v1326_v31 = vld [vmem:[#allocation2 + $0xb0] sm:$0xff]  ;;  %v893_v51 = vadd.f32 %v2240_v35, %v748_v40 }
 0x200   :  { %v1243_v59 = vadd.f32 %v1199_v39, %v2149_v23  ;;  %v749_v15 = vmul.f32 %v1326_v31, %v2238_v38 }
 0x201   :  { %v1201_v1 = vrot.slane %v1030_v63, 2  ;;  %v1203_v3 = vrot.slane %v1031_v11, 2 }
 0x202   :  { %1260 = vst.msk [vmem:[#allocation9 + $0x38] sm:$0xff] %vm1252_vm5, %v1243_v59  ;;  %v976_v17 = vpop.permute.xlu1 %975  ;;  %v978_v30 = vpop.permute.xlu0 %977  ;;  %v894_v18 = vadd.f32 %v2242_v50, %v749_v15 }
 0x203   :  { %v1202_v4 = vsel %vm1179_vm4, %v1200_v45, %v1201_v1  ;;  %v1204_v37 = vsel %vm1179_vm4, %v1201_v1, %v1203_v3  ;;  %v1032_v13 = vadd.f32 %v976_v17, %v887_v48  ;;  %v1033_v60 = vadd.f32 %v978_v30, %v888_v54 }
 0x204   :  { %v1244_v23 = vadd.f32 %v1202_v4, %v2162_v0  ;;  %v1245_v52 = vadd.f32 %v1204_v37, %v2164_v55  ;;  %v890_v0 = vadd.f32 %v2232_v16, %v745_v32  ;;  %v747_v55 = vmul.f32 %v1324_v28, %v2238_v38 }
 0x205   :  { %v1205_v33 = vrot.slane %v1032_v13, 2  ;;  %v1206_v46 = vrot.slane %v1033_v60, 2  ;;  %v895_v54 = vadd.f32 %v2245_v53, %v750_v27 }
 0x206   :  { %1261 = vst.msk [vmem:[#allocation9 + $0x40] sm:$0xff] %vm1252_vm5, %v1244_v23  ;;  %1262 = vst.msk [vmem:[#allocation9 + $0x48] sm:$0xff] %vm1252_vm5, %v1245_v52  ;;  %v980_v34 = vpop.permute.xlu1 %979  ;;  %v982_v29 = vpop.permute.xlu0 %981  ;;  %v892_v20 = vadd.f32 %v2236_v24, %v747_v55 }
 0x207   :  { %v1207_v8 = vsel %vm1179_vm4, %v1205_v33, %v1206_v46  ;;  %v1034_v5 = vadd.f32 %v980_v34, %v889_v57  ;;  %v1035_v6 = vadd.f32 %v982_v29, %v890_v0 }
 0x208   :  { %v1246_v36 = vadd.f32 %v1207_v8, %v2177_v58 }
 0x209   :  { %v1208_v22 = vrot.slane %v1034_v5, 2  ;;  %v1210_v61 = vrot.slane %v1035_v6, 2 }
 0x20a   :  { %1263 = vst.msk [vmem:[#allocation9 + $0x50] sm:$0xff] %vm1252_vm5, %v1246_v36  ;;  %v984_v16 = vpop.permute.xlu1 %983  ;;  %v986_v44 = vpop.permute.xlu0 %985 }
 0x20b   :  { %v1209_v49 = vsel %vm1179_vm4, %v1206_v46, %v1208_v22  ;;  %v1036_v62 = vadd.f32 %v984_v16, %v891_v7  ;;  %v1037_v58 = vadd.f32 %v986_v44, %v892_v20 }
 0x20c   :  { %v1247_v24 = vadd.f32 %v1209_v49, %v2185_v43 }
 0x20d   :  { %v1211_v41 = vrot.slane %v1036_v62, 2  ;;  %v1213_v12 = vrot.slane %v1037_v58, 2 }
 0x20e   :  { %1264 = vst.msk [vmem:[#allocation9 + $0x58] sm:$0xff] %vm1252_vm5, %v1247_v24  ;;  %v988_v39 = vpop.permute.xlu1 %987  ;;  %v990_v63 = vpop.permute.xlu0 %989 }
 0x20f   :  { %v1212_v11 = vsel %vm1179_vm4, %v1210_v61, %v1211_v41  ;;  %v1214_v48 = vsel %vm1179_vm4, %v1211_v41, %v1213_v12  ;;  %v1038_v59 = vadd.f32 %v988_v39, %v893_v51  ;;  %v1039_v35 = vadd.f32 %v990_v63, %v894_v18 }
 0x210   :  { %v1248_v43 = vadd.f32 %v1212_v11, %v2193_v19  ;;  %v1249_v50 = vadd.f32 %v1214_v48, %v2195_v42 }
 0x211   :  { %v1215_v45 = vrot.slane %v1038_v59, 2  ;;  %v1216_v1 = vrot.slane %v1039_v35, 2 }
 0x212   :  { %1265 = vst.msk [vmem:[#allocation9 + $0x60] sm:$0xff] %vm1252_vm5, %v1248_v43  ;;  %1266 = vst.msk [vmem:[#allocation9 + $0x68] sm:$0xff] %vm1252_vm5, %v1249_v50  ;;  %v992_v38 = vpop.permute.xlu1 %991 }
 0x213   :  { %v1217_v3 = vsel %vm1179_vm4, %v1215_v45, %v1216_v1  ;;  %v1040_v2 = vadd.f32 %v992_v38, %v895_v54 }
 0x214   :  { %v1250_v14 = vadd.f32 %v1217_v3, %v2201_v47 }
 0x215   :  { %v1218_v17 = vrot.slane %v1040_v2, 2 }
 0x216   :  { %1267 = vst.msk [vmem:[#allocation9 + $0x70] sm:$0xff] %vm1252_vm5, %v1250_v14 }
 0x217   :  { %v1219_v19 = vsel %vm1179_vm4, %v1216_v1, %v1218_v17 }
 0x218   :  { %v1251_v42 = vadd.f32 %v1219_v19, %v2206_v26 }
 0x21a   :  { %1268 = vst.msk [vmem:[#allocation9 + $0x78] sm:$0xff] %vm1252_vm5, %v1251_v42 }
 0x21b   :  { %1373 = shalt.err (!%p1370_p3)
}
 0x21c   :  { %s1374_s20 = scalar_lea.hbm %s2354_s3, 2048 }
 0x21d   :  { %p1375_p4 = scmp.ne.s32.totalorder %s2354_s3, %s1374_s20  ;;  %p1378_p5 = scmp.lt.u32.totalorder %s1374_s20, %s2354_s3 }
 0x21f   :  { %p1380_p6 = pnand %p1378_p5, %p1375_p4 }
 0x221   :  { %1383 = shalt.err (!%p1380_p6)
}
 0x222   :  { %1280 = dma.vmem_to_hbm [thread:$0]  %s1275_s16, 2048, %s2354_s3, [#allocation6], %s1392_s26, %s1392_s26, %s1393_s27  }
 0x223   :  { %1388 = dma.done.wait [#allocation6], 2048  }
 0x224   :  { %1389 = vsyncadd [#allocation6], 4294965248 }
 0x225   :  { %1284 = vsyncpa [#allocation5], 1 }
 0x226   :  { %1285 = vsyncpa [#allocation6], 1 }
 0x227   :  { %1286 = vsyncpa [#allocation7], 1 }

</bundles_post_ra>
